<compile_context>
chip_gen: v7x
topology: tpu7x:2x2x1
jax: 0.10.0
libtpu: 0.0.40
codegen_flags: <defaults>
</compile_context>

<pallas_src>
import functools

import jax
import jax.numpy as jnp
from jax.experimental import pallas as pl
from jax.experimental.pallas import tpu as pltpu


# ---------------------------------------------------------------------------
# tiling helpers
# ---------------------------------------------------------------------------

def _div_tile(n, target, quantum):
    """Largest divisor of n that is <= target and a multiple of quantum,
    falling back to n itself (full dim is always BlockSpec-legal)."""
    if n <= target:
        return n
    t = min(target, n)
    t -= t % quantum
    while t >= quantum:
        if n % t == 0:
            return t
        t -= quantum
    return n


# ---------------------------------------------------------------------------
# 1) fused linear (+ optional input LayerNorm prologue), lane-dense output
#    Used for the Q projection (N = D, optional pre-norm LN) and the fused
#    K|V projection of the encoder memory (N = 2D).
# ---------------------------------------------------------------------------

def _proj_kernel(x_ref, w_ref, b_ref, g_ref, bt_ref, o_ref, *, ln_in, eps):
    x = x_ref[...]
    if ln_in:
        xf = x.astype(jnp.float32)
        mu = jnp.mean(xf, axis=-1, keepdims=True)
        c = xf - mu
        var = jnp.mean(c * c, axis=-1, keepdims=True)
        x = c * jax.lax.rsqrt(var + eps) * g_ref[...] + bt_ref[...]
    y = jnp.dot(x.astype(w_ref.dtype), w_ref[...],
                preferred_element_type=jnp.float32)
    y = y + b_ref[...]
    o_ref[...] = y.astype(o_ref.dtype)


def linear_ln(x, w, b, gamma, beta, *, ln_in, eps, out_dtype, tile_m=512):
    M, D = x.shape
    N = w.shape[1]
    tm = _div_tile(M, tile_m, 8)
    cost = pl.CostEstimate(
        flops=2 * M * D * N,
        transcendentals=0,
        bytes_accessed=int(M * D * x.dtype.itemsize + D * N * w.dtype.itemsize
                           + M * N * jnp.dtype(out_dtype).itemsize))
    return pl.pallas_call(
        functools.partial(_proj_kernel, ln_in=ln_in, eps=eps),
        grid=(M // tm,),
        out_shape=jax.ShapeDtypeStruct((M, N), out_dtype),
        in_specs=[
            pl.BlockSpec((tm, D), lambda i: (i, 0)),
            pl.BlockSpec((D, N), lambda i: (0, 0)),
            pl.BlockSpec((1, N), lambda i: (0, 0)),
            pl.BlockSpec((1, D), lambda i: (0, 0)),
            pl.BlockSpec((1, D), lambda i: (0, 0)),
        ],
        out_specs=pl.BlockSpec((tm, N), lambda i: (i, 0)),
        compiler_params=pltpu.CompilerParams(
            dimension_semantics=("parallel",)),
        cost_estimate=cost,
    )(x, w, b, gamma, beta)


# ---------------------------------------------------------------------------
# 2) attention core, tiled (batch, q-tile, kv-tile) with online softmax.
#    q: (B, T, D), kv: (B, S, 2D) both lane-dense; heads split in-kernel with
#    static lane slices so all matmuls stay 2-D.  Scale is pre-folded into Q.
# ---------------------------------------------------------------------------

def _mha_kernel(q_ref, kv_ref, o_ref, m_ref, l_ref, acc_ref, *, nhead):
    H = nhead
    tq, D = q_ref.shape[1], q_ref.shape[2]
    hd = D // H
    s_idx = pl.program_id(2)

    @pl.when(s_idx == 0)
    def _init():
        m_ref[...] = jnp.full(m_ref.shape, -jnp.inf, jnp.float32)
        l_ref[...] = jnp.zeros(l_ref.shape, jnp.float32)
        acc_ref[...] = jnp.zeros(acc_ref.shape, jnp.float32)

    q = q_ref[0]       # (tq, D)     scale already folded into wq / bq
    kv = kv_ref[0]     # (ts, 2D)    [K | V] per row, head-major columns

    for h in range(H):                              # static unroll over heads
        lo, hi = h * hd, (h + 1) * hd
        q_h = q[:, lo:hi]                           # (tq, hd)
        k_h = kv[:, lo:hi]                          # (ts, hd)
        v_h = kv[:, D + lo:D + hi]                  # (ts, hd)
        s = jax.lax.dot_general(                    # (tq, ts)  q @ k^T
            q_h, k_h, (((1,), (1,)), ((), ())),
            preferred_element_type=jnp.float32)
        m_prev = m_ref[:, h:h + 1]
        m_new = jnp.maximum(m_prev, jnp.max(s, axis=-1, keepdims=True))
        alpha = jnp.exp(m_prev - m_new)
        p = jnp.exp(s - m_new)
        l_ref[:, h:h + 1] = alpha * l_ref[:, h:h + 1] + jnp.sum(
            p, axis=-1, keepdims=True)
        acc_ref[:, lo:hi] = alpha * acc_ref[:, lo:hi] + jnp.dot(
            p.astype(v_h.dtype), v_h, preferred_element_type=jnp.float32)
        m_ref[:, h:h + 1] = m_new

    @pl.when(s_idx == pl.num_programs(2) - 1)
    def _finish():
        inv = pl.reciprocal(l_ref[...], approx=True)     # (tq, H)
        acc = acc_ref[...]                               # (tq, D)
        for h in range(H):
            lo, hi = h * hd, (h + 1) * hd
            o_ref[0, :, lo:hi] = (acc[:, lo:hi]
                                  * inv[:, h:h + 1]).astype(o_ref.dtype)


def mha(q, kv, *, nhead, out_dtype, tile_q=128, tile_s=512):
    B, T, D = q.shape
    S = kv.shape[1]
    tq = _div_tile(T, tile_q, 8)
    ts = _div_tile(S, tile_s, 8)
    cost = pl.CostEstimate(
        flops=4 * B * T * S * D,
        transcendentals=B * nhead * T * S,
        bytes_accessed=int((B * T * D + B * S * 2 * D) * q.dtype.itemsize
                           + B * T * D * jnp.dtype(out_dtype).itemsize))
    return pl.pallas_call(
        functools.partial(_mha_kernel, nhead=nhead),
        grid=(B, T // tq, S // ts),
        out_shape=jax.ShapeDtypeStruct((B, T, D), out_dtype),
        in_specs=[
            pl.BlockSpec((1, tq, D), lambda b, i, s: (b, i, 0)),
            pl.BlockSpec((1, ts, 2 * D), lambda b, i, s: (b, s, 0)),
        ],
        out_specs=pl.BlockSpec((1, tq, D), lambda b, i, s: (b, i, 0)),
        scratch_shapes=[
            pltpu.VMEM((tq, nhead), jnp.float32),   # running max per head
            pltpu.VMEM((tq, nhead), jnp.float32),   # running denom per head
            pltpu.VMEM((tq, D), jnp.float32),       # running numerator
        ],
        compiler_params=pltpu.CompilerParams(
            dimension_semantics=("parallel", "parallel", "arbitrary")),
        cost_estimate=cost,
    )(q, kv)


# ---------------------------------------------------------------------------
# 3) output projection: full-K (M, D) @ (D, D), fused residual (+ LayerNorm)
# ---------------------------------------------------------------------------

def _oproj_kernel(a_ref, w_ref, b_ref, res_ref, g_ref, bt_ref, o_ref,
                  *, ln_out, eps):
    y = jnp.dot(a_ref[...], w_ref[...], preferred_element_type=jnp.float32)
    y = y + b_ref[...] + res_ref[...].astype(jnp.float32)
    if ln_out:
        mu = jnp.mean(y, axis=-1, keepdims=True)
        c = y - mu
        var = jnp.mean(c * c, axis=-1, keepdims=True)
        y = c * jax.lax.rsqrt(var + eps) * g_ref[...] + bt_ref[...]
    o_ref[...] = y.astype(o_ref.dtype)


def out_proj_residual(a, w, b, res, gamma, beta, *, ln_out, eps, out_dtype,
                      tile_m=512):
    M, D = a.shape
    tm = _div_tile(M, tile_m, 8)
    cost = pl.CostEstimate(
        flops=2 * M * D * D,
        transcendentals=0,
        bytes_accessed=int(M * D * (a.dtype.itemsize + res.dtype.itemsize
                                    + jnp.dtype(out_dtype).itemsize)
                           + D * D * w.dtype.itemsize))
    return pl.pallas_call(
        functools.partial(_oproj_kernel, ln_out=ln_out, eps=eps),
        grid=(M // tm,),
        out_shape=jax.ShapeDtypeStruct((M, D), out_dtype),
        in_specs=[
            pl.BlockSpec((tm, D), lambda i: (i, 0)),
            pl.BlockSpec((D, D), lambda i: (0, 0)),
            pl.BlockSpec((1, D), lambda i: (0, 0)),
            pl.BlockSpec((tm, D), lambda i: (i, 0)),
            pl.BlockSpec((1, D), lambda i: (0, 0)),
            pl.BlockSpec((1, D), lambda i: (0, 0)),
        ],
        out_specs=pl.BlockSpec((tm, D), lambda i: (i, 0)),
        compiler_params=pltpu.CompilerParams(
            dimension_semantics=("parallel",)),
        cost_estimate=cost,
    )(a, w, b, res, gamma, beta)


# ---------------------------------------------------------------------------
# 4) fused FFN with F-axis (dim_feedforward) tiling:
#    y = [LN_out](x + act([LN_in](x) @ W1 + b1) @ W2 + b2)
# ---------------------------------------------------------------------------

def _ffn_kernel(x_ref, w1_ref, b1_ref, w2_ref, b2_ref, g_in_ref, bt_in_ref,
                g_out_ref, bt_out_ref, o_ref, xin_ref, acc_ref,
                *, eps, ln_in, ln_out, activation):
    f = pl.program_id(1)

    @pl.when(f == 0)
    def _init():
        acc_ref[...] = jnp.zeros(acc_ref.shape, jnp.float32)
        x = x_ref[...].astype(jnp.float32)
        if ln_in:
            mu = jnp.mean(x, axis=-1, keepdims=True)
            c = x - mu
            var = jnp.mean(c * c, axis=-1, keepdims=True)
            x = c * jax.lax.rsqrt(var + eps) * g_in_ref[...] + bt_in_ref[...]
        xin_ref[...] = x.astype(xin_ref.dtype)

    h = jnp.dot(xin_ref[...], w1_ref[...], preferred_element_type=jnp.float32)
    h = h + b1_ref[...]
    if activation == "relu":
        h = jnp.maximum(h, 0.0)
    else:  # "gelu" (tanh approximation -> EUP friendly)
        h = jax.nn.gelu(h, approximate=True)
    acc_ref[...] += jnp.dot(h.astype(w2_ref.dtype), w2_ref[...],
                            preferred_element_type=jnp.float32)

    @pl.when(f == pl.num_programs(1) - 1)
    def _finish():
        y = acc_ref[...] + b2_ref[...] + x_ref[...].astype(jnp.float32)
        if ln_out:
            mu = jnp.mean(y, axis=-1, keepdims=True)
            c = y - mu
            var = jnp.mean(c * c, axis=-1, keepdims=True)
            y = c * jax.lax.rsqrt(var + eps) * g_out_ref[...] + bt_out_ref[...]
        o_ref[...] = y.astype(o_ref.dtype)


def ffn_block(x, w1, b1, w2, b2, g_in, bt_in, g_out, bt_out, *, eps, ln_in,
              ln_out, activation, out_dtype, tile_m=512, tile_f=2048):
    M, D = x.shape
    F = w1.shape[1]
    tm = _div_tile(M, tile_m, 8)
    tf = _div_tile(F, tile_f, 128)
    cost = pl.CostEstimate(
        flops=4 * M * D * F,
        transcendentals=int(M * F) if activation != "relu" else 0,
        bytes_accessed=int(M * D * (x.dtype.itemsize
                                    + jnp.dtype(out_dtype).itemsize)
                           + 2 * D * F * w1.dtype.itemsize))
    return pl.pallas_call(
        functools.partial(_ffn_kernel, eps=eps, ln_in=ln_in, ln_out=ln_out,
                          activation=activation),
        grid=(M // tm, F // tf),
        out_shape=jax.ShapeDtypeStruct((M, D), out_dtype),
        in_specs=[
            pl.BlockSpec((tm, D), lambda i, f: (i, 0)),
            pl.BlockSpec((D, tf), lambda i, f: (0, f)),
            pl.BlockSpec((1, tf), lambda i, f: (0, f)),
            pl.BlockSpec((tf, D), lambda i, f: (f, 0)),
            pl.BlockSpec((1, D), lambda i, f: (0, 0)),
            pl.BlockSpec((1, D), lambda i, f: (0, 0)),
            pl.BlockSpec((1, D), lambda i, f: (0, 0)),
            pl.BlockSpec((1, D), lambda i, f: (0, 0)),
            pl.BlockSpec((1, D), lambda i, f: (0, 0)),
        ],
        out_specs=pl.BlockSpec((tm, D), lambda i, f: (i, 0)),
        scratch_shapes=[
            pltpu.VMEM((tm, D), w1.dtype),      # (possibly LayerNorm'd) input
            pltpu.VMEM((tm, D), jnp.float32),   # f32 accumulator over F tiles
        ],
        compiler_params=pltpu.CompilerParams(
            dimension_semantics=("parallel", "arbitrary")),
        cost_estimate=cost,
    )(x, w1, b1, w2, b2, g_in, bt_in, g_out, bt_out)


# ---------------------------------------------------------------------------
# Decoder-layer forward
# ---------------------------------------------------------------------------

def transformer_decoder_layer(tgt, memory, params, *, nhead, norm_first=False,
                              eps=1e-5, activation="relu",
                              compute_dtype=jnp.float32):
    T, B, D = tgt.shape
    S = memory.shape[0]
    assert D % nhead == 0, "d_model must be divisible by nhead"
    hd = D // nhead
    p = params
    cd = compute_dtype
    out_dtype = tgt.dtype

    # Single transpose+cast pass per activation (batch-major lane-dense slabs).
    xb = jnp.transpose(tgt, (1, 0, 2)).reshape(B * T, D).astype(cd)
    mb = jnp.transpose(memory, (1, 0, 2)).reshape(B * S, D).astype(cd)

    # Fold the 1/sqrt(hd) attention scale into the Q projection (trace-time).
    scale = 1.0 / float(hd) ** 0.5
    wq = (p["wq"] * scale).astype(cd)                                  # (D, D)
    bq = (p["bq"] * scale).reshape(1, D).astype(jnp.float32)
    wkv = jnp.concatenate([p["wk"], p["wv"]], axis=1).astype(cd)       # (D, 2D)
    bkv = jnp.concatenate([p["bk"], p["bv"]], axis=0
                          ).reshape(1, 2 * D).astype(jnp.float32)
    wo = p["wo"].astype(cd)
    bo = p["bo"].reshape(1, D).astype(jnp.float32)
    w1 = p["w1"].astype(cd)
    b1 = p["b1"].reshape(1, -1).astype(jnp.float32)
    w2 = p["w2"].astype(cd)
    b2 = p["b2"].reshape(1, D).astype(jnp.float32)
    g2 = p["g2"].reshape(1, D).astype(jnp.float32)
    be2 = p["be2"].reshape(1, D).astype(jnp.float32)
    g3 = p["g3"].reshape(1, D).astype(jnp.float32)
    be3 = p["be3"].reshape(1, D).astype(jnp.float32)

    # Fused K|V projection of the encoder memory (lane-dense (B*S, 2D)).
    kv = linear_ln(mb, wkv, bkv, g2, be2, ln_in=False, eps=eps, out_dtype=cd)
    kv3 = kv.reshape(B, S, 2 * D)

    # Q projection; pre-norm LayerNorm fused as prologue when norm_first.
    q = linear_ln(xb, wq, bq, g2, be2, ln_in=norm_first, eps=eps, out_dtype=cd)
    q3 = q.reshape(B, T, D)

    # Cross-attention (flash-style online softmax), lane-dense (B, T, D) out.
    a = mha(q3, kv3, nhead=nhead, out_dtype=cd)
    a2 = a.reshape(B * T, D)

    # Output projection + residual (+ post-norm LN2).
    x = out_proj_residual(a2, wo, bo, xb, g2, be2, ln_out=not norm_first,
                          eps=eps, out_dtype=cd)

    # FFN (+ pre-norm LN3 prologue or post-norm LN3 epilogue) + residual.
    y = ffn_block(x, w1, b1, w2, b2, g3, be3, g3, be3, eps=eps,
                  ln_in=norm_first, ln_out=not norm_first,
                  activation=activation, out_dtype=out_dtype)

    return jnp.transpose(y.reshape(B, T, D), (1, 0, 2))                # (T, B, D)


# ---------------------------------------------------------------------------
# Pure-JAX reference (PyTorch semantics) for the sanity check
# ---------------------------------------------------------------------------

def reference(tgt, memory, p, *, nhead, norm_first=False, eps=1e-5,
              activation="relu"):
    T, B, D = tgt.shape
    S = memory.shape[0]
    hd = D // nhead

    def lin(x, w, b):
        return x @ w + b

    def ln(z, g, be):
        mu = z.mean(-1, keepdims=True)
        var = ((z - mu) ** 2).mean(-1, keepdims=True)
        return (z - mu) / jnp.sqrt(var + eps) * g + be

    def mha_ref(x):
        q = lin(x.reshape(T * B, D), p["wq"], p["bq"]).reshape(T, B, nhead, hd).transpose(1, 2, 0, 3)
        k = lin(memory.reshape(S * B, D), p["wk"], p["bk"]).reshape(S, B, nhead, hd).transpose(1, 2, 0, 3)
        v = lin(memory.reshape(S * B, D), p["wv"], p["bv"]).reshape(S, B, nhead, hd).transpose(1, 2, 0, 3)
        s = jnp.einsum("bhtd,bhsd->bhts", q, k) / jnp.sqrt(hd)
        a = jax.nn.softmax(s, axis=-1)
        o = jnp.einsum("bhts,bhsd->bhtd", a, v).transpose(2, 0, 1, 3).reshape(T * B, D)
        return lin(o, p["wo"], p["bo"]).reshape(T, B, D)

    def ff(x):
        h = lin(x.reshape(T * B, D), p["w1"], p["b1"])
        if activation == "relu":
            h = jax.nn.relu(h)
        else:
            h = jax.nn.gelu(h, approximate=True)
        return lin(h, p["w2"], p["b2"]).reshape(T, B, D)

    x = tgt
    if norm_first:
        x = x + mha_ref(ln(x, p["g2"], p["be2"]))
        x = x + ff(ln(x, p["g3"], p["be3"]))
    else:
        x = ln(x + mha_ref(x), p["g2"], p["be2"])
        x = ln(x + ff(x), p["g3"], p["be3"])
    return x


# ---------------------------------------------------------------------------
# Deterministic parameter construction (weights stored as (in, out))
# ---------------------------------------------------------------------------

def make_params(key, d_model, nhead, dim_feedforward):
    ks = jax.random.split(key, 12)
    scale = 0.05

    def w(k, shp):
        return jax.random.normal(k, shp, jnp.float32) * scale

    return dict(
        wq=w(ks[0], (d_model, d_model)), bq=w(ks[6], (d_model,)),
        wk=w(ks[1], (d_model, d_model)), bk=w(ks[7], (d_model,)),
        wv=w(ks[2], (d_model, d_model)), bv=w(ks[8], (d_model,)),
        wo=w(ks[3], (d_model, d_model)), bo=w(ks[9], (d_model,)),
        w1=w(ks[4], (d_model, dim_feedforward)), b1=w(ks[10], (dim_feedforward,)),
        w2=w(ks[5], (dim_feedforward, d_model)), b2=w(ks[11], (d_model,)),
        g2=jnp.ones((d_model,), jnp.float32), be2=jnp.zeros((d_model,), jnp.float32),
        g3=jnp.ones((d_model,), jnp.float32), be3=jnp.zeros((d_model,), jnp.float32),
    )


# ---------------------------------------------------------------------------

if __name__ == "__main__":
    T, S, B = 8, 16, 2           # tgt seq len, memory seq len, batch
    D, NHEAD, FF = 32, 4, 64     # d_model, nhead, dim_feedforward

    key = jax.random.PRNGKey(0)
    k_t, k_m, k_p = jax.random.split(key, 3)
    tgt = jax.random.normal(k_t, (T, B, D), jnp.float32)
    memory = jax.random.normal(k_m, (S, B, D), jnp.float32)
    params = make_params(k_p, D, NHEAD, FF)

    # post-norm (PyTorch default), f32
    fwd = jax.jit(functools.partial(transformer_decoder_layer,
                                    nhead=NHEAD, norm_first=False))
    out = jax.block_until_ready(fwd(tgt, memory, params))
    ref = reference(tgt, memory, params, nhead=NHEAD, norm_first=False)
    assert out.shape == (T, B, D)
    assert jnp.allclose(out, ref, rtol=1e-2, atol=1e-2), "post-norm mismatch"

    # pre-norm, f32
    fwd_pre = jax.jit(functools.partial(transformer_decoder_layer,
                                        nhead=NHEAD, norm_first=True))
    out_pre = jax.block_until_ready(fwd_pre(tgt, memory, params))
    ref_pre = reference(tgt, memory, params, nhead=NHEAD, norm_first=True)
    assert jnp.allclose(out_pre, ref_pre, rtol=1e-2, atol=1e-2), "pre-norm mismatch"

    # gelu (tanh approximation) post-norm, f32
    fwd_gelu = jax.jit(functools.partial(transformer_decoder_layer,
                                         nhead=NHEAD, norm_first=False,
                                         activation="gelu"))
    out_gelu = jax.block_until_ready(fwd_gelu(tgt, memory, params))
    ref_gelu = reference(tgt, memory, params, nhead=NHEAD, norm_first=False,
                         activation="gelu")
    assert jnp.allclose(out_gelu, ref_gelu, rtol=1e-2, atol=1e-2), "gelu mismatch"

    # bf16 MXU-input / bf16 residual-carry path (f32 accum + LN inside kernels)
    fwd_bf16 = jax.jit(functools.partial(transformer_decoder_layer,
                                         nhead=NHEAD, norm_first=False,
                                         compute_dtype=jnp.bfloat16))
    out_bf16 = jax.block_until_ready(fwd_bf16(tgt, memory, params))
    assert jnp.allclose(out_bf16, ref, rtol=5e-2, atol=5e-2), "bf16 path mismatch"

    print("KERNEL_OK")
</pallas_src>

<mosaic_0001>
module attributes {stable_mosaic.version = 11 : i64} {
  func.func @_proj_kernel(%arg0: i32, %arg1: memref<16x32xf32, #tpu.memory_space<vmem>>, %arg2: memref<32x32xf32, #tpu.memory_space<vmem>>, %arg3: memref<1x32xf32, #tpu.memory_space<vmem>>, %arg4: memref<1x32xf32, #tpu.memory_space<vmem>>, %arg5: memref<1x32xf32, #tpu.memory_space<vmem>>, %arg6: memref<16x32xf32, #tpu.memory_space<vmem>>) attributes {dimension_semantics = [#tpu.dimension_semantics<parallel>], iteration_bounds = array<i64: 1>, scalar_prefetch = 0 : i64, scratch_operands = 0 : i64, tpu.core_type = #tpu.core_type<tc>, window_params = [{transform_indices = @transform_0, window_bounds = array<i64: 16, 32>}, {pipeline_mode = #tpu.pipeline_mode<synchronous>, transform_indices = @transform_1, window_bounds = array<i64: 32, 32>}, {pipeline_mode = #tpu.pipeline_mode<synchronous>, transform_indices = @transform_2, window_bounds = array<i64: 1, 32>}, {pipeline_mode = #tpu.pipeline_mode<synchronous>, transform_indices = @transform_3, window_bounds = array<i64: 1, 32>}, {pipeline_mode = #tpu.pipeline_mode<synchronous>, transform_indices = @transform_4, window_bounds = array<i64: 1, 32>}, {transform_indices = @transform_5, window_bounds = array<i64: 16, 32>}]} {
    %c0 = arith.constant 0 : index
    %c0_0 = arith.constant 0 : index
    %0 = vector.load %arg1[%c0, %c0_0] : memref<16x32xf32, #tpu.memory_space<vmem>>, vector<16x32xf32>
    %c0_1 = arith.constant 0 : index
    %c0_2 = arith.constant 0 : index
    %1 = vector.load %arg2[%c0_1, %c0_2] : memref<32x32xf32, #tpu.memory_space<vmem>>, vector<32x32xf32>
    %cst = arith.constant dense<0.000000e+00> : vector<16x32xf32>
    %2 = tpu.matmul %0, %1, %cst {dimension_numbers = #tpu.dot_dimension_numbers<[1], [0], [0], [1], [0, 0, 1, 1], [], []>} : vector<16x32xf32>, vector<32x32xf32>, vector<16x32xf32> -> vector<16x32xf32>
    %c0_3 = arith.constant 0 : index
    %c0_4 = arith.constant 0 : index
    %3 = vector.load %arg3[%c0_3, %c0_4] : memref<1x32xf32, #tpu.memory_space<vmem>>, vector<1x32xf32>
    %4 = vector.broadcast %3 : vector<1x32xf32> to vector<16x32xf32>
    %5 = arith.addf %2, %4 : vector<16x32xf32>
    %c0_5 = arith.constant 0 : index
    %c0_6 = arith.constant 0 : index
    %6 = vector.load %arg6[%c0_5, %c0_6] : memref<16x32xf32, #tpu.memory_space<vmem>>, vector<16x32xf32>
    tpu.vector_store %arg6[%c0_5, %c0_6], %5 {strides = array<i32>} : memref<16x32xf32, #tpu.memory_space<vmem>>, vector<16x32xf32>,
    return
  }
  func.func @transform_0(%arg0: i32) -> (i32, i32) {
    %c0_i32 = arith.constant 0 : i32
    %c0_i32_0 = arith.constant 0 : i32
    return %arg0, %c0_i32 : i32, i32
  }
  func.func @transform_1(%arg0: i32) -> (i32, i32) {
    %c0_i32 = arith.constant 0 : i32
    %c0_i32_0 = arith.constant 0 : i32
    %c0_i32_1 = arith.constant 0 : i32
    return %c0_i32, %c0_i32_0 : i32, i32
  }
  func.func @transform_2(%arg0: i32) -> (i32, i32) {
    %c0_i32 = arith.constant 0 : i32
    %c0_i32_0 = arith.constant 0 : i32
    %c0_i32_1 = arith.constant 0 : i32
    return %c0_i32, %c0_i32_0 : i32, i32
  }
  func.func @transform_3(%arg0: i32) -> (i32, i32) {
    %c0_i32 = arith.constant 0 : i32
    %c0_i32_0 = arith.constant 0 : i32
    %c0_i32_1 = arith.constant 0 : i32
    return %c0_i32, %c0_i32_0 : i32, i32
  }
  func.func @transform_4(%arg0: i32) -> (i32, i32) {
    %c0_i32 = arith.constant 0 : i32
    %c0_i32_0 = arith.constant 0 : i32
    %c0_i32_1 = arith.constant 0 : i32
    return %c0_i32, %c0_i32_0 : i32, i32
  }
  func.func @transform_5(%arg0: i32) -> (i32, i32) {
    %c0_i32 = arith.constant 0 : i32
    %c0_i32_0 = arith.constant 0 : i32
    return %arg0, %c0_i32 : i32, i32
  }
}

module attributes {stable_mosaic.version = 11 : i64} {
  func.func @_proj_kernel(%arg0: i32, %arg1: memref<32x32xf32, #tpu.memory_space<vmem>>, %arg2: memref<32x64xf32, #tpu.memory_space<vmem>>, %arg3: memref<1x64xf32, #tpu.memory_space<vmem>>, %arg4: memref<1x32xf32, #tpu.memory_space<vmem>>, %arg5: memref<1x32xf32, #tpu.memory_space<vmem>>, %arg6: memref<32x64xf32, #tpu.memory_space<vmem>>) attributes {dimension_semantics = [#tpu.dimension_semantics<parallel>], iteration_bounds = array<i64: 1>, scalar_prefetch = 0 : i64, scratch_operands = 0 : i64, tpu.core_type = #tpu.core_type<tc>, window_params = [{transform_indices = @transform_0, window_bounds = array<i64: 32, 32>}, {pipeline_mode = #tpu.pipeline_mode<synchronous>, transform_indices = @transform_1, window_bounds = array<i64: 32, 64>}, {pipeline_mode = #tpu.pipeline_mode<synchronous>, transform_indices = @transform_2, window_bounds = array<i64: 1, 64>}, {pipeline_mode = #tpu.pipeline_mode<synchronous>, transform_indices = @transform_3, window_bounds = array<i64: 1, 32>}, {pipeline_mode = #tpu.pipeline_mode<synchronous>, transform_indices = @transform_4, window_bounds = array<i64: 1, 32>}, {transform_indices = @transform_5, window_bounds = array<i64: 32, 64>}]} {
    %c0 = arith.constant 0 : index
    %c0_0 = arith.constant 0 : index
    %0 = vector.load %arg1[%c0, %c0_0] : memref<32x32xf32, #tpu.memory_space<vmem>>, vector<32x32xf32>
    %c0_1 = arith.constant 0 : index
    %c0_2 = arith.constant 0 : index
    %1 = vector.load %arg2[%c0_1, %c0_2] : memref<32x64xf32, #tpu.memory_space<vmem>>, vector<32x64xf32>
    %cst = arith.constant dense<0.000000e+00> : vector<32x64xf32>
    %2 = tpu.matmul %0, %1, %cst {dimension_numbers = #tpu.dot_dimension_numbers<[1], [0], [0], [1], [0, 0, 1, 1], [], []>} : vector<32x32xf32>, vector<32x64xf32>, vector<32x64xf32> -> vector<32x64xf32>
    %c0_3 = arith.constant 0 : index
    %c0_4 = arith.constant 0 : index
    %3 = vector.load %arg3[%c0_3, %c0_4] : memref<1x64xf32, #tpu.memory_space<vmem>>, vector<1x64xf32>
    %4 = vector.broadcast %3 : vector<1x64xf32> to vector<32x64xf32>
    %5 = arith.addf %2, %4 : vector<32x64xf32>
    %c0_5 = arith.constant 0 : index
    %c0_6 = arith.constant 0 : index
    %6 = vector.load %arg6[%c0_5, %c0_6] : memref<32x64xf32, #tpu.memory_space<vmem>>, vector<32x64xf32>
    tpu.vector_store %arg6[%c0_5, %c0_6], %5 {strides = array<i32>} : memref<32x64xf32, #tpu.memory_space<vmem>>, vector<32x64xf32>,
    return
  }
  func.func @transform_0(%arg0: i32) -> (i32, i32) {
    %c0_i32 = arith.constant 0 : i32
    %c0_i32_0 = arith.constant 0 : i32
    return %arg0, %c0_i32 : i32, i32
  }
  func.func @transform_1(%arg0: i32) -> (i32, i32) {
    %c0_i32 = arith.constant 0 : i32
    %c0_i32_0 = arith.constant 0 : i32
    %c0_i32_1 = arith.constant 0 : i32
    return %c0_i32, %c0_i32_0 : i32, i32
  }
  func.func @transform_2(%arg0: i32) -> (i32, i32) {
    %c0_i32 = arith.constant 0 : i32
    %c0_i32_0 = arith.constant 0 : i32
    %c0_i32_1 = arith.constant 0 : i32
    return %c0_i32, %c0_i32_0 : i32, i32
  }
  func.func @transform_3(%arg0: i32) -> (i32, i32) {
    %c0_i32 = arith.constant 0 : i32
    %c0_i32_0 = arith.constant 0 : i32
    %c0_i32_1 = arith.constant 0 : i32
    return %c0_i32, %c0_i32_0 : i32, i32
  }
  func.func @transform_4(%arg0: i32) -> (i32, i32) {
    %c0_i32 = arith.constant 0 : i32
    %c0_i32_0 = arith.constant 0 : i32
    %c0_i32_1 = arith.constant 0 : i32
    return %c0_i32, %c0_i32_0 : i32, i32
  }
  func.func @transform_5(%arg0: i32) -> (i32, i32) {
    %c0_i32 = arith.constant 0 : i32
    %c0_i32_0 = arith.constant 0 : i32
    return %arg0, %c0_i32 : i32, i32
  }
}

module attributes {stable_mosaic.version = 11 : i64} {
  func.func @_oproj_kernel(%arg0: i32, %arg1: memref<16x32xf32, #tpu.memory_space<vmem>>, %arg2: memref<32x32xf32, #tpu.memory_space<vmem>>, %arg3: memref<1x32xf32, #tpu.memory_space<vmem>>, %arg4: memref<16x32xf32, #tpu.memory_space<vmem>>, %arg5: memref<1x32xf32, #tpu.memory_space<vmem>>, %arg6: memref<1x32xf32, #tpu.memory_space<vmem>>, %arg7: memref<16x32xf32, #tpu.memory_space<vmem>>) attributes {dimension_semantics = [#tpu.dimension_semantics<parallel>], iteration_bounds = array<i64: 1>, scalar_prefetch = 0 : i64, scratch_operands = 0 : i64, tpu.core_type = #tpu.core_type<tc>, window_params = [{transform_indices = @transform_0, window_bounds = array<i64: 16, 32>}, {pipeline_mode = #tpu.pipeline_mode<synchronous>, transform_indices = @transform_1, window_bounds = array<i64: 32, 32>}, {pipeline_mode = #tpu.pipeline_mode<synchronous>, transform_indices = @transform_2, window_bounds = array<i64: 1, 32>}, {transform_indices = @transform_3, window_bounds = array<i64: 16, 32>}, {pipeline_mode = #tpu.pipeline_mode<synchronous>, transform_indices = @transform_4, window_bounds = array<i64: 1, 32>}, {pipeline_mode = #tpu.pipeline_mode<synchronous>, transform_indices = @transform_5, window_bounds = array<i64: 1, 32>}, {transform_indices = @transform_6, window_bounds = array<i64: 16, 32>}]} {
    %c0 = arith.constant 0 : index
    %c0_0 = arith.constant 0 : index
    %0 = vector.load %arg1[%c0, %c0_0] : memref<16x32xf32, #tpu.memory_space<vmem>>, vector<16x32xf32>
    %c0_1 = arith.constant 0 : index
    %c0_2 = arith.constant 0 : index
    %1 = vector.load %arg2[%c0_1, %c0_2] : memref<32x32xf32, #tpu.memory_space<vmem>>, vector<32x32xf32>
    %cst = arith.constant dense<0.000000e+00> : vector<16x32xf32>
    %2 = tpu.matmul %0, %1, %cst {dimension_numbers = #tpu.dot_dimension_numbers<[1], [0], [0], [1], [0, 0, 1, 1], [], []>} : vector<16x32xf32>, vector<32x32xf32>, vector<16x32xf32> -> vector<16x32xf32>
    %c0_3 = arith.constant 0 : index
    %c0_4 = arith.constant 0 : index
    %3 = vector.load %arg3[%c0_3, %c0_4] : memref<1x32xf32, #tpu.memory_space<vmem>>, vector<1x32xf32>
    %4 = vector.broadcast %3 : vector<1x32xf32> to vector<16x32xf32>
    %5 = arith.addf %2, %4 : vector<16x32xf32>
    %c0_5 = arith.constant 0 : index
    %c0_6 = arith.constant 0 : index
    %6 = vector.load %arg4[%c0_5, %c0_6] : memref<16x32xf32, #tpu.memory_space<vmem>>, vector<16x32xf32>
    %7 = arith.addf %5, %6 : vector<16x32xf32>
    %cst_7 = arith.constant dense<0.000000e+00> : vector<16xf32>
    %8 = vector.multi_reduction <add>, %7, %cst_7 [1] : vector<16x32xf32> to vector<16xf32>
    %9 = vector.shape_cast %8 : vector<16xf32> to vector<16x1xf32>
    %cst_8 = arith.constant 3.200000e+01 : f32
    %10 = vector.broadcast %cst_8 : f32 to vector<16x1xf32>
    %11 = arith.divf %9, %10 : vector<16x1xf32>
    %12 = vector.broadcast %11 : vector<16x1xf32> to vector<16x32xf32>
    %13 = arith.subf %7, %12 : vector<16x32xf32>
    %14 = arith.mulf %13, %13 : vector<16x32xf32>
    %cst_9 = arith.constant dense<0.000000e+00> : vector<16xf32>
    %15 = vector.multi_reduction <add>, %14, %cst_9 [1] : vector<16x32xf32> to vector<16xf32>
    %16 = vector.shape_cast %15 : vector<16xf32> to vector<16x1xf32>
    %cst_10 = arith.constant 3.200000e+01 : f32
    %17 = vector.broadcast %cst_10 : f32 to vector<16x1xf32>
    %18 = arith.divf %16, %17 : vector<16x1xf32>
    %cst_11 = arith.constant 9.99999974E-6 : f32
    %19 = vector.broadcast %cst_11 : f32 to vector<16x1xf32>
    %20 = arith.addf %18, %19 : vector<16x1xf32>
    %21 = math.rsqrt %20 : vector<16x1xf32>
    %22 = vector.broadcast %21 : vector<16x1xf32> to vector<16x32xf32>
    %23 = arith.mulf %13, %22 : vector<16x32xf32>
    %c0_12 = arith.constant 0 : index
    %c0_13 = arith.constant 0 : index
    %24 = vector.load %arg5[%c0_12, %c0_13] : memref<1x32xf32, #tpu.memory_space<vmem>>, vector<1x32xf32>
    %25 = vector.broadcast %24 : vector<1x32xf32> to vector<16x32xf32>
    %26 = arith.mulf %23, %25 : vector<16x32xf32>
    %c0_14 = arith.constant 0 : index
    %c0_15 = arith.constant 0 : index
    %27 = vector.load %arg6[%c0_14, %c0_15] : memref<1x32xf32, #tpu.memory_space<vmem>>, vector<1x32xf32>
    %28 = vector.broadcast %27 : vector<1x32xf32> to vector<16x32xf32>
    %29 = arith.addf %26, %28 : vector<16x32xf32>
    %c0_16 = arith.constant 0 : index
    %c0_17 = arith.constant 0 : index
    %30 = vector.load %arg7[%c0_16, %c0_17] : memref<16x32xf32, #tpu.memory_space<vmem>>, vector<16x32xf32>
    tpu.vector_store %arg7[%c0_16, %c0_17], %29 {strides = array<i32>} : memref<16x32xf32, #tpu.memory_space<vmem>>, vector<16x32xf32>,
    return
  }
  func.func @transform_0(%arg0: i32) -> (i32, i32) {
    %c0_i32 = arith.constant 0 : i32
    %c0_i32_0 = arith.constant 0 : i32
    return %arg0, %c0_i32 : i32, i32
  }
  func.func @transform_1(%arg0: i32) -> (i32, i32) {
    %c0_i32 = arith.constant 0 : i32
    %c0_i32_0 = arith.constant 0 : i32
    %c0_i32_1 = arith.constant 0 : i32
    return %c0_i32, %c0_i32_0 : i32, i32
  }
  func.func @transform_2(%arg0: i32) -> (i32, i32) {
    %c0_i32 = arith.constant 0 : i32
    %c0_i32_0 = arith.constant 0 : i32
    %c0_i32_1 = arith.constant 0 : i32
    return %c0_i32, %c0_i32_0 : i32, i32
  }
  func.func @transform_3(%arg0: i32) -> (i32, i32) {
    %c0_i32 = arith.constant 0 : i32
    %c0_i32_0 = arith.constant 0 : i32
    return %arg0, %c0_i32 : i32, i32
  }
  func.func @transform_4(%arg0: i32) -> (i32, i32) {
    %c0_i32 = arith.constant 0 : i32
    %c0_i32_0 = arith.constant 0 : i32
    %c0_i32_1 = arith.constant 0 : i32
    return %c0_i32, %c0_i32_0 : i32, i32
  }
  func.func @transform_5(%arg0: i32) -> (i32, i32) {
    %c0_i32 = arith.constant 0 : i32
    %c0_i32_0 = arith.constant 0 : i32
    %c0_i32_1 = arith.constant 0 : i32
    return %c0_i32, %c0_i32_0 : i32, i32
  }
  func.func @transform_6(%arg0: i32) -> (i32, i32) {
    %c0_i32 = arith.constant 0 : i32
    %c0_i32_0 = arith.constant 0 : i32
    return %arg0, %c0_i32 : i32, i32
  }
}

module attributes {stable_mosaic.version = 11 : i64} {
  func.func @_mha_kernel(%arg0: i32, %arg1: i32, %arg2: i32, %arg3: memref<1x8x32xf32, #tpu.memory_space<vmem>>, %arg4: memref<1x16x64xf32, #tpu.memory_space<vmem>>, %arg5: memref<1x8x32xf32, #tpu.memory_space<vmem>>, %arg6: memref<8x4xf32, #tpu.memory_space<vmem>>, %arg7: memref<8x4xf32, #tpu.memory_space<vmem>>, %arg8: memref<8x32xf32, #tpu.memory_space<vmem>>) attributes {dimension_semantics = [#tpu.dimension_semantics<parallel>, #tpu.dimension_semantics<parallel>, #tpu.dimension_semantics<arbitrary>], iteration_bounds = array<i64: 2, 1, 1>, scalar_prefetch = 0 : i64, scratch_operands = 3 : i64, tpu.core_type = #tpu.core_type<tc>, window_params = [{transform_indices = @transform_0, window_bounds = array<i64: 1, 8, 32>}, {transform_indices = @transform_1, window_bounds = array<i64: 1, 16, 64>}, {transform_indices = @transform_2, window_bounds = array<i64: 1, 8, 32>}]} {
    %c0_i32 = arith.constant 0 : i32
    %0 = arith.cmpi eq, %arg2, %c0_i32 : i32
    %1 = arith.extui %0 : i1 to i32
    %c0_i32_0 = arith.constant 0 : i32
    %2 = arith.cmpi ne, %1, %c0_i32_0 : i32
    scf.if %2 {
      %cst_65 = arith.constant 0xFF800000 : f32
      %114 = vector.broadcast %cst_65 : f32 to vector<8x4xf32>
      %c0_66 = arith.constant 0 : index
      %c0_67 = arith.constant 0 : index
      %115 = vector.load %arg6[%c0_66, %c0_67] : memref<8x4xf32, #tpu.memory_space<vmem>>, vector<8x4xf32>
      tpu.vector_store %arg6[%c0_66, %c0_67], %114 {strides = array<i32>} : memref<8x4xf32, #tpu.memory_space<vmem>>, vector<8x4xf32>,
      %cst_68 = arith.constant 0.000000e+00 : f32
      %116 = vector.broadcast %cst_68 : f32 to vector<8x4xf32>
      %c0_69 = arith.constant 0 : index
      %c0_70 = arith.constant 0 : index
      %117 = vector.load %arg7[%c0_69, %c0_70] : memref<8x4xf32, #tpu.memory_space<vmem>>, vector<8x4xf32>
      tpu.vector_store %arg7[%c0_69, %c0_70], %116 {strides = array<i32>} : memref<8x4xf32, #tpu.memory_space<vmem>>, vector<8x4xf32>,
      %cst_71 = arith.constant 0.000000e+00 : f32
      %118 = vector.broadcast %cst_71 : f32 to vector<8x32xf32>
      %c0_72 = arith.constant 0 : index
      %c0_73 = arith.constant 0 : index
      %119 = vector.load %arg8[%c0_72, %c0_73] : memref<8x32xf32, #tpu.memory_space<vmem>>, vector<8x32xf32>
      tpu.vector_store %arg8[%c0_72, %c0_73], %118 {strides = array<i32>} : memref<8x32xf32, #tpu.memory_space<vmem>>, vector<8x32xf32>,
    } else {
    }
    %c0 = arith.constant 0 : index
    %c0_1 = arith.constant 0 : index
    %c0_2 = arith.constant 0 : index
    %3 = vector.load %arg3[%c0, %c0_1, %c0_2] : memref<1x8x32xf32, #tpu.memory_space<vmem>>, vector<1x8x32xf32>
    %4 = vector.shape_cast %3 : vector<1x8x32xf32> to vector<8x32xf32>
    %c0_3 = arith.constant 0 : index
    %c0_4 = arith.constant 0 : index
    %c0_5 = arith.constant 0 : index
    %5 = vector.load %arg4[%c0_3, %c0_4, %c0_5] : memref<1x16x64xf32, #tpu.memory_space<vmem>>, vector<1x16x64xf32>
    %6 = vector.shape_cast %5 : vector<1x16x64xf32> to vector<16x64xf32>
    %7 = vector.extract_strided_slice %4 {offsets = [0, 0], sizes = [8, 8], strides = [1, 1]} : vector<8x32xf32> to vector<8x8xf32>
    %8 = vector.extract_strided_slice %6 {offsets = [0, 0], sizes = [16, 8], strides = [1, 1]} : vector<16x64xf32> to vector<16x8xf32>
    %9 = vector.extract_strided_slice %6 {offsets = [0, 32], sizes = [16, 8], strides = [1, 1]} : vector<16x64xf32> to vector<16x8xf32>
    %cst = arith.constant dense<0.000000e+00> : vector<8x16xf32>
    %10 = tpu.matmul %7, %8, %cst {dimension_numbers = #tpu.dot_dimension_numbers<[1], [1], [0], [0], [0, 0, 1, 0], [], []>} : vector<8x8xf32>, vector<16x8xf32>, vector<8x16xf32> -> vector<8x16xf32>
    %c0_6 = arith.constant 0 : index
    %c0_7 = arith.constant 0 : index
    %11 = vector.load %arg6[%c0_6, %c0_7] : memref<8x4xf32, #tpu.memory_space<vmem>>, vector<8x1xf32>
    %cst_8 = arith.constant dense<0xFF800000> : vector<8xf32>
    %12 = vector.multi_reduction <maximumf>, %10, %cst_8 [1] : vector<8x16xf32> to vector<8xf32>
    %13 = vector.shape_cast %12 : vector<8xf32> to vector<8x1xf32>
    %14 = arith.maximumf %11, %13 : vector<8x1xf32>
    %15 = arith.subf %11, %14 : vector<8x1xf32>
    %16 = math.exp %15 : vector<8x1xf32>
    %17 = vector.broadcast %14 : vector<8x1xf32> to vector<8x16xf32>
    %18 = arith.subf %10, %17 : vector<8x16xf32>
    %19 = math.exp %18 : vector<8x16xf32>
    %c0_9 = arith.constant 0 : index
    %c0_10 = arith.constant 0 : index
    %20 = vector.load %arg7[%c0_9, %c0_10] : memref<8x4xf32, #tpu.memory_space<vmem>>, vector<8x1xf32>
    %21 = arith.mulf %16, %20 : vector<8x1xf32>
    %cst_11 = arith.constant dense<0.000000e+00> : vector<8xf32>
    %22 = vector.multi_reduction <add>, %19, %cst_11 [1] : vector<8x16xf32> to vector<8xf32>
    %23 = vector.shape_cast %22 : vector<8xf32> to vector<8x1xf32>
    %24 = arith.addf %21, %23 : vector<8x1xf32>
    %c0_12 = arith.constant 0 : index
    %c0_13 = arith.constant 0 : index
    %25 = vector.load %arg7[%c0_12, %c0_13] : memref<8x4xf32, #tpu.memory_space<vmem>>, vector<8x1xf32>
    tpu.vector_store %arg7[%c0_12, %c0_13], %24 {strides = array<i32>} : memref<8x4xf32, #tpu.memory_space<vmem>>, vector<8x1xf32>,
    %c0_14 = arith.constant 0 : index
    %c0_15 = arith.constant 0 : index
    %26 = vector.load %arg8[%c0_14, %c0_15] : memref<8x32xf32, #tpu.memory_space<vmem>>, vector<8x8xf32>
    %27 = vector.broadcast %16 : vector<8x1xf32> to vector<8x8xf32>
    %28 = arith.mulf %27, %26 : vector<8x8xf32>
    %cst_16 = arith.constant dense<0.000000e+00> : vector<8x8xf32>
    %29 = tpu.matmul %19, %9, %cst_16 {dimension_numbers = #tpu.dot_dimension_numbers<[1], [0], [0], [1], [0, 0, 1, 1], [], []>} : vector<8x16xf32>, vector<16x8xf32>, vector<8x8xf32> -> vector<8x8xf32>
    %30 = arith.addf %28, %29 : vector<8x8xf32>
    %c0_17 = arith.constant 0 : index
    %c0_18 = arith.constant 0 : index
    %31 = vector.load %arg8[%c0_17, %c0_18] : memref<8x32xf32, #tpu.memory_space<vmem>>, vector<8x8xf32>
    tpu.vector_store %arg8[%c0_17, %c0_18], %30 {strides = array<i32>} : memref<8x32xf32, #tpu.memory_space<vmem>>, vector<8x8xf32>,
    %c0_19 = arith.constant 0 : index
    %c0_20 = arith.constant 0 : index
    %32 = vector.load %arg6[%c0_19, %c0_20] : memref<8x4xf32, #tpu.memory_space<vmem>>, vector<8x1xf32>
    tpu.vector_store %arg6[%c0_19, %c0_20], %14 {strides = array<i32>} : memref<8x4xf32, #tpu.memory_space<vmem>>, vector<8x1xf32>,
    %33 = vector.extract_strided_slice %4 {offsets = [0, 8], sizes = [8, 8], strides = [1, 1]} : vector<8x32xf32> to vector<8x8xf32>
    %34 = vector.extract_strided_slice %6 {offsets = [0, 8], sizes = [16, 8], strides = [1, 1]} : vector<16x64xf32> to vector<16x8xf32>
    %35 = vector.extract_strided_slice %6 {offsets = [0, 40], sizes = [16, 8], strides = [1, 1]} : vector<16x64xf32> to vector<16x8xf32>
    %cst_21 = arith.constant dense<0.000000e+00> : vector<8x16xf32>
    %36 = tpu.matmul %33, %34, %cst_21 {dimension_numbers = #tpu.dot_dimension_numbers<[1], [1], [0], [0], [0, 0, 1, 0], [], []>} : vector<8x8xf32>, vector<16x8xf32>, vector<8x16xf32> -> vector<8x16xf32>
    %c0_22 = arith.constant 0 : index
    %c1 = arith.constant 1 : index
    %37 = vector.load %arg6[%c0_22, %c1] : memref<8x4xf32, #tpu.memory_space<vmem>>, vector<8x1xf32>
    %cst_23 = arith.constant dense<0xFF800000> : vector<8xf32>
    %38 = vector.multi_reduction <maximumf>, %36, %cst_23 [1] : vector<8x16xf32> to vector<8xf32>
    %39 = vector.shape_cast %38 : vector<8xf32> to vector<8x1xf32>
    %40 = arith.maximumf %37, %39 : vector<8x1xf32>
    %41 = arith.subf %37, %40 : vector<8x1xf32>
    %42 = math.exp %41 : vector<8x1xf32>
    %43 = vector.broadcast %40 : vector<8x1xf32> to vector<8x16xf32>
    %44 = arith.subf %36, %43 : vector<8x16xf32>
    %45 = math.exp %44 : vector<8x16xf32>
    %c0_24 = arith.constant 0 : index
    %c1_25 = arith.constant 1 : index
    %46 = vector.load %arg7[%c0_24, %c1_25] : memref<8x4xf32, #tpu.memory_space<vmem>>, vector<8x1xf32>
    %47 = arith.mulf %42, %46 : vector<8x1xf32>
    %cst_26 = arith.constant dense<0.000000e+00> : vector<8xf32>
    %48 = vector.multi_reduction <add>, %45, %cst_26 [1] : vector<8x16xf32> to vector<8xf32>
    %49 = vector.shape_cast %48 : vector<8xf32> to vector<8x1xf32>
    %50 = arith.addf %47, %49 : vector<8x1xf32>
    %c0_27 = arith.constant 0 : index
    %c1_28 = arith.constant 1 : index
    %51 = vector.load %arg7[%c0_27, %c1_28] : memref<8x4xf32, #tpu.memory_space<vmem>>, vector<8x1xf32>
    tpu.vector_store %arg7[%c0_27, %c1_28], %50 {strides = array<i32>} : memref<8x4xf32, #tpu.memory_space<vmem>>, vector<8x1xf32>,
    %c0_29 = arith.constant 0 : index
    %c8 = arith.constant 8 : index
    %52 = vector.load %arg8[%c0_29, %c8] : memref<8x32xf32, #tpu.memory_space<vmem>>, vector<8x8xf32>
    %53 = vector.broadcast %42 : vector<8x1xf32> to vector<8x8xf32>
    %54 = arith.mulf %53, %52 : vector<8x8xf32>
    %cst_30 = arith.constant dense<0.000000e+00> : vector<8x8xf32>
    %55 = tpu.matmul %45, %35, %cst_30 {dimension_numbers = #tpu.dot_dimension_numbers<[1], [0], [0], [1], [0, 0, 1, 1], [], []>} : vector<8x16xf32>, vector<16x8xf32>, vector<8x8xf32> -> vector<8x8xf32>
    %56 = arith.addf %54, %55 : vector<8x8xf32>
    %c0_31 = arith.constant 0 : index
    %c8_32 = arith.constant 8 : index
    %57 = vector.load %arg8[%c0_31, %c8_32] : memref<8x32xf32, #tpu.memory_space<vmem>>, vector<8x8xf32>
    tpu.vector_store %arg8[%c0_31, %c8_32], %56 {strides = array<i32>} : memref<8x32xf32, #tpu.memory_space<vmem>>, vector<8x8xf32>,
    %c0_33 = arith.constant 0 : index
    %c1_34 = arith.constant 1 : index
    %58 = vector.load %arg6[%c0_33, %c1_34] : memref<8x4xf32, #tpu.memory_space<vmem>>, vector<8x1xf32>
    tpu.vector_store %arg6[%c0_33, %c1_34], %40 {strides = array<i32>} : memref<8x4xf32, #tpu.memory_space<vmem>>, vector<8x1xf32>,
    %59 = vector.extract_strided_slice %4 {offsets = [0, 16], sizes = [8, 8], strides = [1, 1]} : vector<8x32xf32> to vector<8x8xf32>
    %60 = vector.extract_strided_slice %6 {offsets = [0, 16], sizes = [16, 8], strides = [1, 1]} : vector<16x64xf32> to vector<16x8xf32>
    %61 = vector.extract_strided_slice %6 {offsets = [0, 48], sizes = [16, 8], strides = [1, 1]} : vector<16x64xf32> to vector<16x8xf32>
    %cst_35 = arith.constant dense<0.000000e+00> : vector<8x16xf32>
    %62 = tpu.matmul %59, %60, %cst_35 {dimension_numbers = #tpu.dot_dimension_numbers<[1], [1], [0], [0], [0, 0, 1, 0], [], []>} : vector<8x8xf32>, vector<16x8xf32>, vector<8x16xf32> -> vector<8x16xf32>
    %c0_36 = arith.constant 0 : index
    %c2 = arith.constant 2 : index
    %63 = vector.load %arg6[%c0_36, %c2] : memref<8x4xf32, #tpu.memory_space<vmem>>, vector<8x1xf32>
    %cst_37 = arith.constant dense<0xFF800000> : vector<8xf32>
    %64 = vector.multi_reduction <maximumf>, %62, %cst_37 [1] : vector<8x16xf32> to vector<8xf32>
    %65 = vector.shape_cast %64 : vector<8xf32> to vector<8x1xf32>
    %66 = arith.maximumf %63, %65 : vector<8x1xf32>
    %67 = arith.subf %63, %66 : vector<8x1xf32>
    %68 = math.exp %67 : vector<8x1xf32>
    %69 = vector.broadcast %66 : vector<8x1xf32> to vector<8x16xf32>
    %70 = arith.subf %62, %69 : vector<8x16xf32>
    %71 = math.exp %70 : vector<8x16xf32>
    %c0_38 = arith.constant 0 : index
    %c2_39 = arith.constant 2 : index
    %72 = vector.load %arg7[%c0_38, %c2_39] : memref<8x4xf32, #tpu.memory_space<vmem>>, vector<8x1xf32>
    %73 = arith.mulf %68, %72 : vector<8x1xf32>
    %cst_40 = arith.constant dense<0.000000e+00> : vector<8xf32>
    %74 = vector.multi_reduction <add>, %71, %cst_40 [1] : vector<8x16xf32> to vector<8xf32>
    %75 = vector.shape_cast %74 : vector<8xf32> to vector<8x1xf32>
    %76 = arith.addf %73, %75 : vector<8x1xf32>
    %c0_41 = arith.constant 0 : index
    %c2_42 = arith.constant 2 : index
    %77 = vector.load %arg7[%c0_41, %c2_42] : memref<8x4xf32, #tpu.memory_space<vmem>>, vector<8x1xf32>
    tpu.vector_store %arg7[%c0_41, %c2_42], %76 {strides = array<i32>} : memref<8x4xf32, #tpu.memory_space<vmem>>, vector<8x1xf32>,
    %c0_43 = arith.constant 0 : index
    %c16 = arith.constant 16 : index
    %78 = vector.load %arg8[%c0_43, %c16] : memref<8x32xf32, #tpu.memory_space<vmem>>, vector<8x8xf32>
    %79 = vector.broadcast %68 : vector<8x1xf32> to vector<8x8xf32>
    %80 = arith.mulf %79, %78 : vector<8x8xf32>
    %cst_44 = arith.constant dense<0.000000e+00> : vector<8x8xf32>
    %81 = tpu.matmul %71, %61, %cst_44 {dimension_numbers = #tpu.dot_dimension_numbers<[1], [0], [0], [1], [0, 0, 1, 1], [], []>} : vector<8x16xf32>, vector<16x8xf32>, vector<8x8xf32> -> vector<8x8xf32>
    %82 = arith.addf %80, %81 : vector<8x8xf32>
    %c0_45 = arith.constant 0 : index
    %c16_46 = arith.constant 16 : index
    %83 = vector.load %arg8[%c0_45, %c16_46] : memref<8x32xf32, #tpu.memory_space<vmem>>, vector<8x8xf32>
    tpu.vector_store %arg8[%c0_45, %c16_46], %82 {strides = array<i32>} : memref<8x32xf32, #tpu.memory_space<vmem>>, vector<8x8xf32>,
    %c0_47 = arith.constant 0 : index
    %c2_48 = arith.constant 2 : index
    %84 = vector.load %arg6[%c0_47, %c2_48] : memref<8x4xf32, #tpu.memory_space<vmem>>, vector<8x1xf32>
    tpu.vector_store %arg6[%c0_47, %c2_48], %66 {strides = array<i32>} : memref<8x4xf32, #tpu.memory_space<vmem>>, vector<8x1xf32>,
    %85 = vector.extract_strided_slice %4 {offsets = [0, 24], sizes = [8, 8], strides = [1, 1]} : vector<8x32xf32> to vector<8x8xf32>
    %86 = vector.extract_strided_slice %6 {offsets = [0, 24], sizes = [16, 8], strides = [1, 1]} : vector<16x64xf32> to vector<16x8xf32>
    %87 = vector.extract_strided_slice %6 {offsets = [0, 56], sizes = [16, 8], strides = [1, 1]} : vector<16x64xf32> to vector<16x8xf32>
    %cst_49 = arith.constant dense<0.000000e+00> : vector<8x16xf32>
    %88 = tpu.matmul %85, %86, %cst_49 {dimension_numbers = #tpu.dot_dimension_numbers<[1], [1], [0], [0], [0, 0, 1, 0], [], []>} : vector<8x8xf32>, vector<16x8xf32>, vector<8x16xf32> -> vector<8x16xf32>
    %c0_50 = arith.constant 0 : index
    %c3 = arith.constant 3 : index
    %89 = vector.load %arg6[%c0_50, %c3] : memref<8x4xf32, #tpu.memory_space<vmem>>, vector<8x1xf32>
    %cst_51 = arith.constant dense<0xFF800000> : vector<8xf32>
    %90 = vector.multi_reduction <maximumf>, %88, %cst_51 [1] : vector<8x16xf32> to vector<8xf32>
    %91 = vector.shape_cast %90 : vector<8xf32> to vector<8x1xf32>
    %92 = arith.maximumf %89, %91 : vector<8x1xf32>
    %93 = arith.subf %89, %92 : vector<8x1xf32>
    %94 = math.exp %93 : vector<8x1xf32>
    %95 = vector.broadcast %92 : vector<8x1xf32> to vector<8x16xf32>
    %96 = arith.subf %88, %95 : vector<8x16xf32>
    %97 = math.exp %96 : vector<8x16xf32>
    %c0_52 = arith.constant 0 : index
    %c3_53 = arith.constant 3 : index
    %98 = vector.load %arg7[%c0_52, %c3_53] : memref<8x4xf32, #tpu.memory_space<vmem>>, vector<8x1xf32>
    %99 = arith.mulf %94, %98 : vector<8x1xf32>
    %cst_54 = arith.constant dense<0.000000e+00> : vector<8xf32>
    %100 = vector.multi_reduction <add>, %97, %cst_54 [1] : vector<8x16xf32> to vector<8xf32>
    %101 = vector.shape_cast %100 : vector<8xf32> to vector<8x1xf32>
    %102 = arith.addf %99, %101 : vector<8x1xf32>
    %c0_55 = arith.constant 0 : index
    %c3_56 = arith.constant 3 : index
    %103 = vector.load %arg7[%c0_55, %c3_56] : memref<8x4xf32, #tpu.memory_space<vmem>>, vector<8x1xf32>
    tpu.vector_store %arg7[%c0_55, %c3_56], %102 {strides = array<i32>} : memref<8x4xf32, #tpu.memory_space<vmem>>, vector<8x1xf32>,
    %c0_57 = arith.constant 0 : index
    %c24 = arith.constant 24 : index
    %104 = vector.load %arg8[%c0_57, %c24] : memref<8x32xf32, #tpu.memory_space<vmem>>, vector<8x8xf32>
    %105 = vector.broadcast %94 : vector<8x1xf32> to vector<8x8xf32>
    %106 = arith.mulf %105, %104 : vector<8x8xf32>
    %cst_58 = arith.constant dense<0.000000e+00> : vector<8x8xf32>
    %107 = tpu.matmul %97, %87, %cst_58 {dimension_numbers = #tpu.dot_dimension_numbers<[1], [0], [0], [1], [0, 0, 1, 1], [], []>} : vector<8x16xf32>, vector<16x8xf32>, vector<8x8xf32> -> vector<8x8xf32>
    %108 = arith.addf %106, %107 : vector<8x8xf32>
    %c0_59 = arith.constant 0 : index
    %c24_60 = arith.constant 24 : index
    %109 = vector.load %arg8[%c0_59, %c24_60] : memref<8x32xf32, #tpu.memory_space<vmem>>, vector<8x8xf32>
    tpu.vector_store %arg8[%c0_59, %c24_60], %108 {strides = array<i32>} : memref<8x32xf32, #tpu.memory_space<vmem>>, vector<8x8xf32>,
    %c0_61 = arith.constant 0 : index
    %c3_62 = arith.constant 3 : index
    %110 = vector.load %arg6[%c0_61, %c3_62] : memref<8x4xf32, #tpu.memory_space<vmem>>, vector<8x1xf32>
    tpu.vector_store %arg6[%c0_61, %c3_62], %92 {strides = array<i32>} : memref<8x4xf32, #tpu.memory_space<vmem>>, vector<8x1xf32>,
    %c0_i32_63 = arith.constant 0 : i32
    %111 = arith.cmpi eq, %arg2, %c0_i32_63 : i32
    %112 = arith.extui %111 : i1 to i32
    %c0_i32_64 = arith.constant 0 : i32
    %113 = arith.cmpi ne, %112, %c0_i32_64 : i32
    scf.if %113 {
      %c0_65 = arith.constant 0 : index
      %c0_66 = arith.constant 0 : index
      %114 = vector.load %arg7[%c0_65, %c0_66] : memref<8x4xf32, #tpu.memory_space<vmem>>, vector<8x4xf32>
      %115 = tpu.reciprocal %114 {approx = true} : vector<8x4xf32> -> vector<8x4xf32>
      %c0_67 = arith.constant 0 : index
      %c0_68 = arith.constant 0 : index
      %116 = vector.load %arg8[%c0_67, %c0_68] : memref<8x32xf32, #tpu.memory_space<vmem>>, vector<8x32xf32>
      %117 = vector.extract_strided_slice %116 {offsets = [0, 0], sizes = [8, 8], strides = [1, 1]} : vector<8x32xf32> to vector<8x8xf32>
      %118 = vector.extract_strided_slice %115 {offsets = [0, 0], sizes = [8, 1], strides = [1, 1]} : vector<8x4xf32> to vector<8x1xf32>
      %119 = vector.broadcast %118 : vector<8x1xf32> to vector<8x8xf32>
      %120 = arith.mulf %117, %119 : vector<8x8xf32>
      %c0_69 = arith.constant 0 : index
      %c0_70 = arith.constant 0 : index
      %c0_71 = arith.constant 0 : index
      %121 = vector.load %arg5[%c0_69, %c0_70, %c0_71] : memref<1x8x32xf32, #tpu.memory_space<vmem>>, vector<1x8x8xf32>
      %122 = vector.shape_cast %121 : vector<1x8x8xf32> to vector<8x8xf32>
      %123 = vector.shape_cast %120 : vector<8x8xf32> to vector<1x8x8xf32>
      tpu.vector_store %arg5[%c0_69, %c0_70, %c0_71], %123 {strides = array<i32>} : memref<1x8x32xf32, #tpu.memory_space<vmem>>, vector<1x8x8xf32>,
      %124 = vector.extract_strided_slice %116 {offsets = [0, 8], sizes = [8, 8], strides = [1, 1]} : vector<8x32xf32> to vector<8x8xf32>
      %125 = vector.extract_strided_slice %115 {offsets = [0, 1], sizes = [8, 1], strides = [1, 1]} : vector<8x4xf32> to vector<8x1xf32>
      %126 = vector.broadcast %125 : vector<8x1xf32> to vector<8x8xf32>
      %127 = arith.mulf %124, %126 : vector<8x8xf32>
      %c0_72 = arith.constant 0 : index
      %c0_73 = arith.constant 0 : index
      %c8_74 = arith.constant 8 : index
      %128 = vector.load %arg5[%c0_72, %c0_73, %c8_74] : memref<1x8x32xf32, #tpu.memory_space<vmem>>, vector<1x8x8xf32>
      %129 = vector.shape_cast %128 : vector<1x8x8xf32> to vector<8x8xf32>
      %130 = vector.shape_cast %127 : vector<8x8xf32> to vector<1x8x8xf32>
      tpu.vector_store %arg5[%c0_72, %c0_73, %c8_74], %130 {strides = array<i32>} : memref<1x8x32xf32, #tpu.memory_space<vmem>>, vector<1x8x8xf32>,
      %131 = vector.extract_strided_slice %116 {offsets = [0, 16], sizes = [8, 8], strides = [1, 1]} : vector<8x32xf32> to vector<8x8xf32>
      %132 = vector.extract_strided_slice %115 {offsets = [0, 2], sizes = [8, 1], strides = [1, 1]} : vector<8x4xf32> to vector<8x1xf32>
      %133 = vector.broadcast %132 : vector<8x1xf32> to vector<8x8xf32>
      %134 = arith.mulf %131, %133 : vector<8x8xf32>
      %c0_75 = arith.constant 0 : index
      %c0_76 = arith.constant 0 : index
      %c16_77 = arith.constant 16 : index
      %135 = vector.load %arg5[%c0_75, %c0_76, %c16_77] : memref<1x8x32xf32, #tpu.memory_space<vmem>>, vector<1x8x8xf32>
      %136 = vector.shape_cast %135 : vector<1x8x8xf32> to vector<8x8xf32>
      %137 = vector.shape_cast %134 : vector<8x8xf32> to vector<1x8x8xf32>
      tpu.vector_store %arg5[%c0_75, %c0_76, %c16_77], %137 {strides = array<i32>} : memref<1x8x32xf32, #tpu.memory_space<vmem>>, vector<1x8x8xf32>,
      %138 = vector.extract_strided_slice %116 {offsets = [0, 24], sizes = [8, 8], strides = [1, 1]} : vector<8x32xf32> to vector<8x8xf32>
      %139 = vector.extract_strided_slice %115 {offsets = [0, 3], sizes = [8, 1], strides = [1, 1]} : vector<8x4xf32> to vector<8x1xf32>
      %140 = vector.broadcast %139 : vector<8x1xf32> to vector<8x8xf32>
      %141 = arith.mulf %138, %140 : vector<8x8xf32>
      %c0_78 = arith.constant 0 : index
      %c0_79 = arith.constant 0 : index
      %c24_80 = arith.constant 24 : index
      %142 = vector.load %arg5[%c0_78, %c0_79, %c24_80] : memref<1x8x32xf32, #tpu.memory_space<vmem>>, vector<1x8x8xf32>
      %143 = vector.shape_cast %142 : vector<1x8x8xf32> to vector<8x8xf32>
      %144 = vector.shape_cast %141 : vector<8x8xf32> to vector<1x8x8xf32>
      tpu.vector_store %arg5[%c0_78, %c0_79, %c24_80], %144 {strides = array<i32>} : memref<1x8x32xf32, #tpu.memory_space<vmem>>, vector<1x8x8xf32>,
    } else {
    }
    return
  }
  func.func @transform_0(%arg0: i32, %arg1: i32, %arg2: i32) -> (i32, i32, i32) {
    %c0_i32 = arith.constant 0 : i32
    %c0_i32_0 = arith.constant 0 : i32
    return %arg0, %arg1, %c0_i32 : i32, i32, i32
  }
  func.func @transform_1(%arg0: i32, %arg1: i32, %arg2: i32) -> (i32, i32, i32) {
    %c0_i32 = arith.constant 0 : i32
    %c0_i32_0 = arith.constant 0 : i32
    return %arg0, %arg2, %c0_i32 : i32, i32, i32
  }
  func.func @transform_2(%arg0: i32, %arg1: i32, %arg2: i32) -> (i32, i32, i32) {
    %c0_i32 = arith.constant 0 : i32
    %c0_i32_0 = arith.constant 0 : i32
    return %arg0, %arg1, %c0_i32 : i32, i32, i32
  }
}

module attributes {stable_mosaic.version = 11 : i64} {
  func.func @_ffn_kernel(%arg0: i32, %arg1: i32, %arg2: memref<16x32xf32, #tpu.memory_space<vmem>>, %arg3: memref<32x64xf32, #tpu.memory_space<vmem>>, %arg4: memref<1x64xf32, #tpu.memory_space<vmem>>, %arg5: memref<64x32xf32, #tpu.memory_space<vmem>>, %arg6: memref<1x32xf32, #tpu.memory_space<vmem>>, %arg7: memref<1x32xf32, #tpu.memory_space<vmem>>, %arg8: memref<1x32xf32, #tpu.memory_space<vmem>>, %arg9: memref<1x32xf32, #tpu.memory_space<vmem>>, %arg10: memref<1x32xf32, #tpu.memory_space<vmem>>, %arg11: memref<16x32xf32, #tpu.memory_space<vmem>>, %arg12: memref<16x32xf32, #tpu.memory_space<vmem>>, %arg13: memref<16x32xf32, #tpu.memory_space<vmem>>) attributes {dimension_semantics = [#tpu.dimension_semantics<parallel>, #tpu.dimension_semantics<arbitrary>], iteration_bounds = array<i64: 1, 1>, scalar_prefetch = 0 : i64, scratch_operands = 2 : i64, tpu.core_type = #tpu.core_type<tc>, window_params = [{transform_indices = @transform_0, window_bounds = array<i64: 16, 32>}, {transform_indices = @transform_1, window_bounds = array<i64: 32, 64>}, {transform_indices = @transform_2, window_bounds = array<i64: 1, 64>}, {transform_indices = @transform_3, window_bounds = array<i64: 64, 32>}, {pipeline_mode = #tpu.pipeline_mode<synchronous>, transform_indices = @transform_4, window_bounds = array<i64: 1, 32>}, {pipeline_mode = #tpu.pipeline_mode<synchronous>, transform_indices = @transform_5, window_bounds = array<i64: 1, 32>}, {pipeline_mode = #tpu.pipeline_mode<synchronous>, transform_indices = @transform_6, window_bounds = array<i64: 1, 32>}, {pipeline_mode = #tpu.pipeline_mode<synchronous>, transform_indices = @transform_7, window_bounds = array<i64: 1, 32>}, {pipeline_mode = #tpu.pipeline_mode<synchronous>, transform_indices = @transform_8, window_bounds = array<i64: 1, 32>}, {transform_indices = @transform_9, window_bounds = array<i64: 16, 32>}]} {
    %c0_i32 = arith.constant 0 : i32
    %0 = arith.cmpi eq, %arg1, %c0_i32 : i32
    %1 = arith.extui %0 : i1 to i32
    %c0_i32_0 = arith.constant 0 : i32
    %2 = arith.cmpi ne, %1, %c0_i32_0 : i32
    scf.if %2 {
      %cst_16 = arith.constant 0.000000e+00 : f32
      %19 = vector.broadcast %cst_16 : f32 to vector<16x32xf32>
      %c0_17 = arith.constant 0 : index
      %c0_18 = arith.constant 0 : index
      %20 = vector.load %arg13[%c0_17, %c0_18] : memref<16x32xf32, #tpu.memory_space<vmem>>, vector<16x32xf32>
      tpu.vector_store %arg13[%c0_17, %c0_18], %19 {strides = array<i32>} : memref<16x32xf32, #tpu.memory_space<vmem>>, vector<16x32xf32>,
      %c0_19 = arith.constant 0 : index
      %c0_20 = arith.constant 0 : index
      %21 = vector.load %arg2[%c0_19, %c0_20] : memref<16x32xf32, #tpu.memory_space<vmem>>, vector<16x32xf32>
      %c0_21 = arith.constant 0 : index
      %c0_22 = arith.constant 0 : index
      %22 = vector.load %arg12[%c0_21, %c0_22] : memref<16x32xf32, #tpu.memory_space<vmem>>, vector<16x32xf32>
      tpu.vector_store %arg12[%c0_21, %c0_22], %21 {strides = array<i32>} : memref<16x32xf32, #tpu.memory_space<vmem>>, vector<16x32xf32>,
    } else {
    }
    %c0 = arith.constant 0 : index
    %c0_1 = arith.constant 0 : index
    %3 = vector.load %arg12[%c0, %c0_1] : memref<16x32xf32, #tpu.memory_space<vmem>>, vector<16x32xf32>
    %c0_2 = arith.constant 0 : index
    %c0_3 = arith.constant 0 : index
    %4 = vector.load %arg3[%c0_2, %c0_3] : memref<32x64xf32, #tpu.memory_space<vmem>>, vector<32x64xf32>
    %cst = arith.constant dense<0.000000e+00> : vector<16x64xf32>
    %5 = tpu.matmul %3, %4, %cst {dimension_numbers = #tpu.dot_dimension_numbers<[1], [0], [0], [1], [0, 0, 1, 1], [], []>} : vector<16x32xf32>, vector<32x64xf32>, vector<16x64xf32> -> vector<16x64xf32>
    %c0_4 = arith.constant 0 : index
    %c0_5 = arith.constant 0 : index
    %6 = vector.load %arg4[%c0_4, %c0_5] : memref<1x64xf32, #tpu.memory_space<vmem>>, vector<1x64xf32>
    %7 = vector.broadcast %6 : vector<1x64xf32> to vector<16x64xf32>
    %8 = arith.addf %5, %7 : vector<16x64xf32>
    %cst_6 = arith.constant 0.000000e+00 : f32
    %9 = vector.broadcast %cst_6 : f32 to vector<16x64xf32>
    %10 = arith.maximumf %8, %9 : vector<16x64xf32>
    %c0_7 = arith.constant 0 : index
    %c0_8 = arith.constant 0 : index
    %11 = vector.load %arg13[%c0_7, %c0_8] : memref<16x32xf32, #tpu.memory_space<vmem>>, vector<16x32xf32>
    %c0_9 = arith.constant 0 : index
    %c0_10 = arith.constant 0 : index
    %12 = vector.load %arg5[%c0_9, %c0_10] : memref<64x32xf32, #tpu.memory_space<vmem>>, vector<64x32xf32>
    %cst_11 = arith.constant dense<0.000000e+00> : vector<16x32xf32>
    %13 = tpu.matmul %10, %12, %cst_11 {dimension_numbers = #tpu.dot_dimension_numbers<[1], [0], [0], [1], [0, 0, 1, 1], [], []>} : vector<16x64xf32>, vector<64x32xf32>, vector<16x32xf32> -> vector<16x32xf32>
    %14 = arith.addf %11, %13 : vector<16x32xf32>
    %c0_12 = arith.constant 0 : index
    %c0_13 = arith.constant 0 : index
    %15 = vector.load %arg13[%c0_12, %c0_13] : memref<16x32xf32, #tpu.memory_space<vmem>>, vector<16x32xf32>
    tpu.vector_store %arg13[%c0_12, %c0_13], %14 {strides = array<i32>} : memref<16x32xf32, #tpu.memory_space<vmem>>, vector<16x32xf32>,
    %c0_i32_14 = arith.constant 0 : i32
    %16 = arith.cmpi eq, %arg1, %c0_i32_14 : i32
    %17 = arith.extui %16 : i1 to i32
    %c0_i32_15 = arith.constant 0 : i32
    %18 = arith.cmpi ne, %17, %c0_i32_15 : i32
    scf.if %18 {
      %c0_16 = arith.constant 0 : index
      %c0_17 = arith.constant 0 : index
      %19 = vector.load %arg13[%c0_16, %c0_17] : memref<16x32xf32, #tpu.memory_space<vmem>>, vector<16x32xf32>
      %c0_18 = arith.constant 0 : index
      %c0_19 = arith.constant 0 : index
      %20 = vector.load %arg6[%c0_18, %c0_19] : memref<1x32xf32, #tpu.memory_space<vmem>>, vector<1x32xf32>
      %21 = vector.broadcast %20 : vector<1x32xf32> to vector<16x32xf32>
      %22 = arith.addf %19, %21 : vector<16x32xf32>
      %c0_20 = arith.constant 0 : index
      %c0_21 = arith.constant 0 : index
      %23 = vector.load %arg2[%c0_20, %c0_21] : memref<16x32xf32, #tpu.memory_space<vmem>>, vector<16x32xf32>
      %24 = arith.addf %22, %23 : vector<16x32xf32>
      %cst_22 = arith.constant dense<0.000000e+00> : vector<16xf32>
      %25 = vector.multi_reduction <add>, %24, %cst_22 [1] : vector<16x32xf32> to vector<16xf32>
      %26 = vector.shape_cast %25 : vector<16xf32> to vector<16x1xf32>
      %cst_23 = arith.constant 3.200000e+01 : f32
      %27 = vector.broadcast %cst_23 : f32 to vector<16x1xf32>
      %28 = arith.divf %26, %27 : vector<16x1xf32>
      %29 = vector.broadcast %28 : vector<16x1xf32> to vector<16x32xf32>
      %30 = arith.subf %24, %29 : vector<16x32xf32>
      %31 = arith.mulf %30, %30 : vector<16x32xf32>
      %cst_24 = arith.constant dense<0.000000e+00> : vector<16xf32>
      %32 = vector.multi_reduction <add>, %31, %cst_24 [1] : vector<16x32xf32> to vector<16xf32>
      %33 = vector.shape_cast %32 : vector<16xf32> to vector<16x1xf32>
      %cst_25 = arith.constant 3.200000e+01 : f32
      %34 = vector.broadcast %cst_25 : f32 to vector<16x1xf32>
      %35 = arith.divf %33, %34 : vector<16x1xf32>
      %cst_26 = arith.constant 9.99999974E-6 : f32
      %36 = vector.broadcast %cst_26 : f32 to vector<16x1xf32>
      %37 = arith.addf %35, %36 : vector<16x1xf32>
      %38 = math.rsqrt %37 : vector<16x1xf32>
      %39 = vector.broadcast %38 : vector<16x1xf32> to vector<16x32xf32>
      %40 = arith.mulf %30, %39 : vector<16x32xf32>
      %c0_27 = arith.constant 0 : index
      %c0_28 = arith.constant 0 : index
      %41 = vector.load %arg9[%c0_27, %c0_28] : memref<1x32xf32, #tpu.memory_space<vmem>>, vector<1x32xf32>
      %42 = vector.broadcast %41 : vector<1x32xf32> to vector<16x32xf32>
      %43 = arith.mulf %40, %42 : vector<16x32xf32>
      %c0_29 = arith.constant 0 : index
      %c0_30 = arith.constant 0 : index
      %44 = vector.load %arg10[%c0_29, %c0_30] : memref<1x32xf32, #tpu.memory_space<vmem>>, vector<1x32xf32>
      %45 = vector.broadcast %44 : vector<1x32xf32> to vector<16x32xf32>
      %46 = arith.addf %43, %45 : vector<16x32xf32>
      %c0_31 = arith.constant 0 : index
      %c0_32 = arith.constant 0 : index
      %47 = vector.load %arg11[%c0_31, %c0_32] : memref<16x32xf32, #tpu.memory_space<vmem>>, vector<16x32xf32>
      tpu.vector_store %arg11[%c0_31, %c0_32], %46 {strides = array<i32>} : memref<16x32xf32, #tpu.memory_space<vmem>>, vector<16x32xf32>,
    } else {
    }
    return
  }
  func.func @transform_0(%arg0: i32, %arg1: i32) -> (i32, i32) {
    %c0_i32 = arith.constant 0 : i32
    %c0_i32_0 = arith.constant 0 : i32
    return %arg0, %c0_i32 : i32, i32
  }
  func.func @transform_1(%arg0: i32, %arg1: i32) -> (i32, i32) {
    %c0_i32 = arith.constant 0 : i32
    %c0_i32_0 = arith.constant 0 : i32
    return %c0_i32, %arg1 : i32, i32
  }
  func.func @transform_2(%arg0: i32, %arg1: i32) -> (i32, i32) {
    %c0_i32 = arith.constant 0 : i32
    %c0_i32_0 = arith.constant 0 : i32
    return %c0_i32, %arg1 : i32, i32
  }
  func.func @transform_3(%arg0: i32, %arg1: i32) -> (i32, i32) {
    %c0_i32 = arith.constant 0 : i32
    %c0_i32_0 = arith.constant 0 : i32
    return %arg1, %c0_i32 : i32, i32
  }
  func.func @transform_4(%arg0: i32, %arg1: i32) -> (i32, i32) {
    %c0_i32 = arith.constant 0 : i32
    %c0_i32_0 = arith.constant 0 : i32
    %c0_i32_1 = arith.constant 0 : i32
    return %c0_i32, %c0_i32_0 : i32, i32
  }
  func.func @transform_5(%arg0: i32, %arg1: i32) -> (i32, i32) {
    %c0_i32 = arith.constant 0 : i32
    %c0_i32_0 = arith.constant 0 : i32
    %c0_i32_1 = arith.constant 0 : i32
    return %c0_i32, %c0_i32_0 : i32, i32
  }
  func.func @transform_6(%arg0: i32, %arg1: i32) -> (i32, i32) {
    %c0_i32 = arith.constant 0 : i32
    %c0_i32_0 = arith.constant 0 : i32
    %c0_i32_1 = arith.constant 0 : i32
    return %c0_i32, %c0_i32_0 : i32, i32
  }
  func.func @transform_7(%arg0: i32, %arg1: i32) -> (i32, i32) {
    %c0_i32 = arith.constant 0 : i32
    %c0_i32_0 = arith.constant 0 : i32
    %c0_i32_1 = arith.constant 0 : i32
    return %c0_i32, %c0_i32_0 : i32, i32
  }
  func.func @transform_8(%arg0: i32, %arg1: i32) -> (i32, i32) {
    %c0_i32 = arith.constant 0 : i32
    %c0_i32_0 = arith.constant 0 : i32
    %c0_i32_1 = arith.constant 0 : i32
    return %c0_i32, %c0_i32_0 : i32, i32
  }
  func.func @transform_9(%arg0: i32, %arg1: i32) -> (i32, i32) {
    %c0_i32 = arith.constant 0 : i32
    %c0_i32_0 = arith.constant 0 : i32
    return %arg0, %c0_i32 : i32, i32
  }
}

</mosaic_0001>

<bundles_post_ra>
// kernel: transformer_decoder_layer.6
= control target key start
LH: loop header
LB: loop body
LE: loop exit
PB: predicated region body
PF: predicated region fallthrough
CT: control target
= control target key end

     0   :  { %vm33_vm0 = vcmask 261120   ;;  %s210_s1 = inlined_call_operand.vmem [shape: f32[32,32], index: 1, kind: input, shape index: {}]   ;;  %s211_s3 = inlined_call_operand.vmem [shape: f32[1,32], index: 3, kind: input, shape index: {}]   ;;  %s212_s4 = inlined_call_operand.vmem [shape: f32[1,32], index: 4, kind: input, shape index: {}]   ;;  %s213_s0 = inlined_call_operand.vmem [shape: f32[16,32], index: 0, kind: input, shape index: {}]   ;;  %s214_s2 = inlined_call_operand.vmem [shape: f32[1,32], index: 2, kind: input, shape index: {}]   ;;  %s215_s5 = inlined_call_operand.vmem [shape: f32[16,32], index: 5, kind: output, shape index: {}]  }
   0x1   :  { %v22_v0 = vld [vmem:[%s210_s1] sm:$0xff]  ;;  %v23_v1 = vld [vmem:[%s210_s1 + $0x8] sm:$0xff]  ;;  %v24_v2 = vld [vmem:[%s210_s1 + $0x10] sm:$0xff] }
   0x2   :  { %v141_v3 = vpack.c.bf16 %v23_v1, %v22_v0  ;;  %v25_v4 = vld [vmem:[%s210_s1 + $0x18] sm:$0xff]  ;;  %v20_v5 = vld [vmem:[%s213_s0] sm:$0xff]  ;;  %v21_v7 = vld [vmem:[%s213_s0 + $0x8] sm:$0xff] }
   0x3   :  { %v145_v6 = vpack.c.bf16 %v25_v4, %v24_v2  ;;  %138 = vmatprep.mubr.msk.f32.mxu0 %vm33_vm0, %v20_v5  ;;  %v121_v8 = vld [vmem:[%s214_s2] ss:$0 sm:$0xff] }
   0x4   :  { %142 = vmatprep.subr.bf16.mxu0 %v141_v3 }
   0x5   :  { %144 = vmatpush3.bf16.msra.mxu0 %v141_v3 }
   0x6   :  { %146 = vmatprep.subr.bf16.mxu0 %v145_v6 }
   0x9   :  { %148 = vmatpush3.bf16.msra.mxu0 %v145_v6 }
   0xc   :  { %139 = vmatmul.mubr.msk.f32.vlgmr.msra.gmra.mrb[0].mxu0 %vm33_vm0, %v21_v7 }
  0xdf   :  { %v140_v9 = vpop.f32.mrb[0].mxu0 }
  0xe0   :  { %v112_v10 = vadd.f32 %v140_v9, %v121_v8  ;;  %v106_v11 = vpop.f32.mrb[1].mxu0 }
  0xe1   :  { %v107_v12 = vadd.f32 %v121_v8, %v106_v11 }
  0xe2   :  { %116 = vst.msk [vmem:[%s215_s5 + $0x8] sm:$0xff] %vm33_vm0, %v112_v10 }
  0xe3   :  { %115 = vst.msk [vmem:[%s215_s5] sm:$0xff] %vm33_vm0, %v107_v12 }

// kernel: transformer_decoder_layer.5
= control target key start
LH: loop header
LB: loop body
LE: loop exit
PB: predicated region body
PF: predicated region fallthrough
CT: control target
= control target key end

     0   :  { %vm35_vm0 = vcmask 261120   ;;  %vm133_vm1 = vcmask 523264   ;;  %s254_s1 = inlined_call_operand.vmem [shape: f32[32,64], index: 1, kind: input, shape index: {}]   ;;  %s255_s3 = inlined_call_operand.vmem [shape: f32[1,32], index: 3, kind: input, shape index: {}]   ;;  %s256_s4 = inlined_call_operand.vmem [shape: f32[1,32], index: 4, kind: input, shape index: {}]   ;;  %s257_s0 = inlined_call_operand.vmem [shape: f32[32,32], index: 0, kind: input, shape index: {}]   ;;  %s258_s2 = inlined_call_operand.vmem [shape: f32[1,64], index: 2, kind: input, shape index: {}]   ;;  %s259_s5 = inlined_call_operand.vmem [shape: f32[32,64], index: 5, kind: output, shape index: {}]  }
   0x1   :  { %v24_v0 = vld [vmem:[%s254_s1] sm:$0xff]  ;;  %v25_v1 = vld [vmem:[%s254_s1 + $0x8] sm:$0xff]  ;;  %v26_v2 = vld [vmem:[%s254_s1 + $0x10] sm:$0xff] }
   0x2   :  { %v169_v3 = vpack.c.bf16 %v25_v1, %v24_v0  ;;  %v27_v4 = vld [vmem:[%s254_s1 + $0x18] sm:$0xff]  ;;  %v20_v5 = vld [vmem:[%s257_s0] sm:$0xff]  ;;  %v22_v6 = vld [vmem:[%s257_s0 + $0x10] sm:$0xff] }
   0x3   :  { %v173_v7 = vpack.c.bf16 %v27_v4, %v26_v2  ;;  %163 = vmatprep.mubr.msk.f32.mxu0 %vm35_vm0, %v20_v5  ;;  %166 = vmatprep.mubr.msk.f32.mxu1 %vm35_vm0, %v22_v6  ;;  %v21_v8 = vld [vmem:[%s257_s0 + $0x8] sm:$0xff]  ;;  %v23_v9 = vld [vmem:[%s257_s0 + $0x18] sm:$0xff]  ;;  %v142_v10 = vld [vmem:[%s258_s2] ss:$0 sm:$0xff] }
   0x4   :  { %170 = vmatprep.subr.bf16.mxu0 %v169_v3  ;;  %177 = vmatprep.subr.bf16.mxu1 %v169_v3 }
   0x5   :  { %172 = vmatpush3.bf16.msra.mxu0 %v169_v3  ;;  %179 = vmatpush3.bf16.msra.mxu1 %v169_v3 }
   0x6   :  { %174 = vmatprep.subr.bf16.mxu0 %v173_v7  ;;  %178 = vmatprep.subr.bf16.mxu1 %v173_v7 }
   0x9   :  { %176 = vmatpush3.bf16.msra.mxu0 %v173_v7  ;;  %180 = vmatpush3.bf16.msra.mxu1 %v173_v7 }
   0xc   :  { %164 = vmatmul.mubr.msk.f32.vlgmr.msra.gmra.mrb[0].mxu0 %vm35_vm0, %v21_v8  ;;  %167 = vmatmul.mubr.msk.f32.vlgmr.msra.gmra.mrb[0].mxu1 %vm35_vm0, %v23_v9 }
  0xdf   :  { %v165_v11 = vpop.f32.mrb[0].mxu0  ;;  %v168_v12 = vpop.f32.mrb[0].mxu1 }
  0xe0   :  { %v120_v13 = vadd.f32 %v165_v11, %v142_v10  ;;  %v130_v14 = vadd.f32 %v168_v12, %v142_v10  ;;  %v114_v15 = vpop.f32.mrb[1].mxu0  ;;  %v124_v16 = vpop.f32.mrb[1].mxu1 }
  0xe1   :  { %v115_v17 = vadd.f32 %v142_v10, %v114_v15  ;;  %v125_v18 = vadd.f32 %v142_v10, %v124_v16 }
  0xe2   :  { %135 = vst.msk [vmem:[%s259_s5 + $0x8] sm:$0xff] %vm133_vm1, %v120_v13  ;;  %137 = vst.msk [vmem:[%s259_s5 + $0x18] sm:$0xff] %vm133_vm1, %v130_v14 }
  0xe3   :  { %134 = vst.msk [vmem:[%s259_s5] sm:$0xff] %vm133_vm1, %v115_v17  ;;  %136 = vst.msk [vmem:[%s259_s5 + $0x10] sm:$0xff] %vm133_vm1, %v125_v18 }

// kernel: transformer_decoder_layer.8
= control target key start
LH: loop header
LB: loop body
LE: loop exit
PB: predicated region body
PF: predicated region fallthrough
CT: control target
= control target key end

     0   :  { %vm36_vm0 = vcmask 261120   ;;  %s289_s1 = inlined_call_operand.vmem [shape: f32[32,32], index: 1, kind: input, shape index: {}]   ;;  %s290_s0 = inlined_call_operand.vmem [shape: f32[16,32], index: 0, kind: input, shape index: {}]   ;;  %s291_s2 = inlined_call_operand.vmem [shape: f32[1,32], index: 2, kind: input, shape index: {}]   ;;  %s292_s3 = inlined_call_operand.vmem [shape: f32[16,32], index: 3, kind: input, shape index: {}]   ;;  %s293_s4 = inlined_call_operand.vmem [shape: f32[1,32], index: 4, kind: input, shape index: {}]   ;;  %s294_s5 = inlined_call_operand.vmem [shape: f32[1,32], index: 5, kind: input, shape index: {}]   ;;  %s295_s6 = inlined_call_operand.vmem [shape: f32[16,32], index: 6, kind: output, shape index: {}]  }
   0x1   :  { %v25_v0 = vld [vmem:[%s289_s1] sm:$0xff]  ;;  %v26_v1 = vld [vmem:[%s289_s1 + $0x8] sm:$0xff]  ;;  %v27_v2 = vld [vmem:[%s289_s1 + $0x10] sm:$0xff] }
   0x2   :  { %v195_v3 = vpack.c.bf16 %v26_v1, %v25_v0  ;;  %v28_v4 = vld [vmem:[%s289_s1 + $0x18] sm:$0xff]  ;;  %v23_v5 = vld [vmem:[%s290_s0] sm:$0xff]  ;;  %v24_v7 = vld [vmem:[%s290_s0 + $0x8] sm:$0xff] }
   0x3   :  { %v199_v6 = vpack.c.bf16 %v28_v4, %v27_v2  ;;  %192 = vmatprep.mubr.msk.f32.mxu0 %vm36_vm0, %v23_v5  ;;  %v173_v8 = vld [vmem:[%s291_s2] ss:$0 sm:$0xff]  ;;  %v119_v14 = vld [vmem:[%s292_s3 + $0x8] sm:$0xff] }
   0x4   :  { %196 = vmatprep.subr.bf16.mxu0 %v195_v3  ;;  %v118_v11 = vld [vmem:[%s292_s3] sm:$0xff] }
   0x5   :  { %198 = vmatpush3.bf16.msra.mxu0 %v195_v3  ;;  %v176_v36 = vld [vmem:[%s293_s4] ss:$0 sm:$0xff] }
   0x6   :  { %200 = vmatprep.subr.bf16.mxu0 %v199_v6  ;;  %v177_v38 = vld [vmem:[%s294_s5] ss:$0 sm:$0xff] }
   0x9   :  { %202 = vmatpush3.bf16.msra.mxu0 %v199_v6 }
   0xc   :  { %193 = vmatmul.mubr.msk.f32.vlgmr.msra.gmra.mrb[0].mxu0 %vm36_vm0, %v24_v7 }
  0xdf   :  { %v194_v9 = vpop.f32.mrb[0].mxu0 }
  0xe0   :  { %v109_v10 = vpop.f32.mrb[1].mxu0  ;;  %v115_v12 = vadd.f32 %v194_v9, %v173_v8 }
  0xe1   :  { %v110_v13 = vadd.f32 %v173_v8, %v109_v10 }
  0xe2   :  { %v121_v17 = vadd.f32 %v119_v14, %v115_v12 }
  0xe3   :  { %v120_v15 = vadd.f32 %v118_v11, %v110_v13 }
  0xe4   :  { %v125_v18 = vsel %vm36_vm0, %v121_v17, 0.0 }
  0xe5   :  { %v122_v16 = vsel %vm36_vm0, %v120_v15, 0.0 }
  0xe6   :  { %123 = vadd.xlane.f32.xlu0 %v122_v16 }
  0xea   :  { %126 = vadd.xlane.f32.xlu0 %v125_v18 }
 0x173   :  { %v124_v19 = vpop.xlane.xlu0 %123 }
 0x174   :  { %v129_v20 = vmul.f32 0.03125, %v124_v19 }
 0x176   :  { %v131_v21 = vsub.f32 %v120_v15, %v129_v20 }
 0x177   :  { %v127_v22 = vpop.xlane.xlu0 %126 }
 0x178   :  { %v130_v23 = vmul.f32 0.03125, %v127_v22  ;;  %v133_v24 = vmul.f32 %v131_v21, %v131_v21 }
 0x17a   :  { %v132_v25 = vsub.f32 %v121_v17, %v130_v23  ;;  %v135_v26 = vsel %vm36_vm0, %v133_v24, 0.0 }
 0x17b   :  { %136 = vadd.xlane.f32.xlu1 %v135_v26 }
 0x17c   :  { %v134_v27 = vmul.f32 %v132_v25, %v132_v25 }
 0x17e   :  { %v138_v28 = vsel %vm36_vm0, %v134_v27, 0.0 }
 0x17f   :  { %139 = vadd.xlane.f32.xlu1 %v138_v28 }
 0x208   :  { %v137_v29 = vpop.xlane.xlu1 %136 }
 0x209   :  { %v141_v30 = vmul.f32 0.03125, %v137_v29 }
 0x20b   :  { %v143_v31 = vadd.f32 1e-05, %v141_v30 }
 0x20c   :  { %v140_v32 = vpop.xlane.xlu1 %139 }
 0x20d   :  { %203 = vrsqrt.f32 %v143_v31  ;;  %v142_v33 = vmul.f32 0.03125, %v140_v32 }
 0x20f   :  { %v144_v34 = vadd.f32 1e-05, %v142_v33 }
 0x211   :  { %205 = vrsqrt.f32 %v144_v34 }
 0x217   :  { %v204_v35 = vpop.eup %203 }
 0x218   :  { %v147_v37 = vmul.f32 %v204_v35, %v131_v21 }
 0x21a   :  { %v156_v39 = vmul.f32 %v176_v36, %v147_v37 }
 0x21b   :  { %v206_v40 = vpop.eup %205 }
 0x21c   :  { %v165_v41 = vadd.f32 %v177_v38, %v156_v39  ;;  %v148_v42 = vmul.f32 %v206_v40, %v132_v25 }
 0x21e   :  { %167 = vst.msk [vmem:[%s295_s6] sm:$0xff] %vm36_vm0, %v165_v41  ;;  %v157_v43 = vmul.f32 %v176_v36, %v148_v42 }
 0x220   :  { %v166_v44 = vadd.f32 %v177_v38, %v157_v43 }
 0x222   :  { %168 = vst.msk [vmem:[%s295_s6 + $0x8] sm:$0xff] %vm36_vm0, %v166_v44 }

// kernel: transformer_decoder_layer.7
= control target key start
LH: loop header
LB: loop body
LE: loop exit
PB: predicated region body
PF: predicated region fallthrough
CT: control target
= control target key end

     0   :  { %s1446_s9 = smov 0   ;;  %s1448_s10 = smov 0   ;;  %s1643_s0 = inlined_call_operand.vmem [shape: f32[2,8,32], index: 0, kind: input, shape index: {}]   ;;  %s1644_s1 = inlined_call_operand.vmem [shape: f32[2,16,64], index: 1, kind: input, shape index: {}]   ;;  %s1645_s2 = inlined_call_operand.vmem [shape: f32[2,8,32], index: 2, kind: output, shape index: {}]  }
   0x1   :  { %s1450_s11 = smov 0  }
   0x2 LB: > { %s31_s12 = sadd.s32 1, %s1407_s10  ;;  %p1149_p0 = scmp.ge.s32.totalorder %s1411_s11, 1  ;;  %s1411_s11 = sphi %s1450_s11, %s12_s11   ;;  %s1407_s10 = sphi %s1448_s10, %s1649_s10   ;;  %s1403_s9 = sphi %s1446_s9, %s1648_s9  }
   0x3   : > { %p33_p1 = scmp.ge.s32.totalorder %s31_s12, 2  ;;  %p154_p2 = scmp.lt.s32.totalorder %s1411_s11, 3 }
   0x5   : > { %s1651_s12 = smov (%p33_p1, %s31_s12), 0  ;;  %p155_p3 = pnand %p1149_p0, %p154_p2 }
   0x6   : > { %p189_p4 = scmp.lt.s32.totalorder (!%p155_p3), %s1403_s9, 1  ;;  %v1413_v0 = vmov (!%p155_p3), 0.0|0.0   ;;  %vm1414_vm0 = vmmov (!%p155_p3), 0   ;;  %v1415_v1 = vmov (!%p155_p3), 0.0   ;;  %vm225_vm1 = vcmask (!%p155_p3), 64512   ;;  %s1418_s21 = smov (!%p155_p3), 96  }
   0x7   : > { %158 = sbr.rel (%p155_p3) target bundleno = 2404 (0x964), region = 28  ;;  %1253 = vmatprep.subr.bf16.mxu0 (!%p155_p3), %v1413_v0  ;;  %1201 = vmatprep.mubr.msk.f32.mxu0 (!%p155_p3), %vm1414_vm0, %v1415_v1  ;;  %vm1478_vm2 = vmpackc.low (!%p155_p3), %vm225_vm1, %vm225_vm1  ;;  %vm217_vm3 = vcmask (!%p155_p3), 31744   ;;  %v1416_v7 = vmov (!%p155_p3), -inf   ;;  %vm306_vm4 = vcmask (!%p155_p3), 130048   ;;  %v1417_v11 = vmov (!%p155_p3), 0   ;;  %s1419_s22 = smov (!%p155_p3), 120  }
   0x8   : > { %1257 = vmatprep.subr.bf16.mxu1 (!%p155_p3), %v1413_v0  ;;  %1208 = vmatprep.mubr.msk.f32.mxu1 (!%p155_p3), %vm1414_vm0, %v1415_v1  ;;  %218 = vst.msk [vmem:[#allocation2] sm:$0xff] (!%p155_p3), %vm217_vm3, %v1416_v7  ;;  %219 = vst.msk [vmem:[#allocation3] sm:$0xff] (!%p155_p3), %vm217_vm3, %v1415_v1  ;;  %vm328_vm5 = vcmask (!%p155_p3), 7168   ;;  %v1420_v35 = vmov (!%p155_p3), 1   ;;  %s1421_s23 = smov (!%p155_p3), 88   ;;  %vm523_vm6 = vcmask (!%p155_p3), 15368  }
   0x9   : > { %1323 = vset.pattern.permute.xlu0 (!%p155_p3), %v1417_v11  ;;  %s1422_s24 = smov (!%p155_p3), 112   ;;  %v1423_v58 = vmov (!%p155_p3), 2   ;;  %vm723_vm7 = vcmask (!%p155_p3), 23568   ;;  %s1424_s25 = smov (!%p155_p3), 80   ;;  %vm923_vm8 = vcmask (!%p155_p3), 31768   ;;  %vm220_vm9 = vcmask (!%p155_p3), 261120  }
   0xa   : > { %1345 = vset.pattern.permute.xlu1 (!%p155_p3), %v1423_v58  ;;  %s1425_s26 = smov (!%p155_p3), 104   ;;  %s1427_s27 = smov (!%p155_p3), 72   ;;  %221 = vst.msk [vmem:[#allocation4] sm:$0xff] (!%p155_p3), %vm220_vm9, %v1415_v1  ;;  %vm616_vm10 = vcmask (!%p155_p3), 130112   ;;  %vm816_vm11 = vcmask (!%p155_p3), 195712   ;;  %vm1016_vm12 = vcmask (!%p155_p3), 261312  }
   0xb   : > { %s1428_s28 = smov (!%p155_p3), 8   ;;  %s1429_s29 = smov (!%p155_p3), 16  }
   0xc   : > { %s1430_s30 = smov (!%p155_p3), 24  }
   0xe   : > { %s1653_s9 = smov (!%p189_p4, %s1403_s9), 1 }
   0xf   : > { %s1172_s13 = sshll.u32 %s1653_s9, 4  ;;  %s1150_s17 = sshll.u32 %s1653_s9, 3  ;;  %v1505_v13 = vld [vmem:[#allocation2] sm:$0xff] }
  0x10   : > { %s204_s16 = scalar_lea.vmem %s1644_s1, %s1172_s13  ;;  %s195_s20 = scalar_lea.vmem %s1643_s0, %s1150_s17 }
  0x11   : > { %v223_v2 = vld [vmem:[%s204_s16] sm:$0xff]  ;;  %v224_v3 = vld [vmem:[%s204_s16 + $0x8] sm:$0xff]  ;;  %s212_s5 = scalar_lea.vmem %s1645_s2, %s1150_s17 }
  0x12   : > { %v1254_v5 = vpack.c.bf16 %v224_v3, %v223_v2  ;;  %v1491_v6 = vld [vmem:[%s195_s20] sm:$0xff]  ;;  %v1500_v12 = vpack.i.bf16 %v224_v3, %v223_v2 }
  0x14   : > { %1256 = vmatpush3.bf16.xpose.msk.msra.mxu0 %vm1478_vm2, %v1254_v5  ;;  %1325 = vrot.lane.b32.xlu1 %v1500_v12, %s1418_s21 }
  0x15   : > { %1264 = vmatprep.subr.bf16.mxu0 %v1413_v0 }
  0x18   : > { %1330 = vrot.lane.b32.xlu1 %v1500_v12, %s1419_s22 }
  0x1b   : > { %1202 = vmatmul.mubr.msk.f32.vlgmr.msra.gmra.mrb[0].mxu0 %vm225_vm1, %v1491_v6 }
  0x1c   : > { %1222 = vmatprep.mubr.msk.f32.mxu0 %vm1414_vm0, %v1415_v1  ;;  %419 = vrot.lane.b32.xlu1 %v1491_v6, %s1419_s22 }
  0x86   : > { %v1326_v17 = vpop.permute.xlu1 %1325 }
  0x87   : > { %v1328_v18 = vunpack.i.h.bf16 %v1326_v17  ;;  %v1327_v19 = vunpack.i.l.bf16 %v1326_v17 }
  0x89   : > { %v1258_v20 = vpack.c.bf16 %v1328_v18, %v1327_v19 }
  0x8a   : > { %v1331_v24 = vpop.permute.xlu1 %1330 }
  0x8b   : > { %1259 = vmatpush3.bf16.msra.mxu1 %v1258_v20  ;;  %v1333_v25 = vunpack.i.h.bf16 %v1331_v24  ;;  %v1332_v26 = vunpack.i.l.bf16 %v1331_v24  ;;  %v1426_v24 = vmov 3  }
  0x8c   : > { %1260 = vmatprep.subr.bf16.mxu1 %v1413_v0 }
  0x8d   : > { %v1261_v27 = vpack.c.bf16 %v1333_v25, %v1332_v26 }
  0x8e   : > { %v420_v29 = vpop.permute.xlu1 %419 }
  0xee   : > { %v301_v8 = vpop.f32.mrb[0].mxu0 }
  0xef   : > { %v1203_v9 = vpop.f32.mrb[1].mxu0  ;;  %v307_v10 = vsel %vm306_vm4, %v301_v8, -inf }
  0xf0   : > { %308 = vmax.xlane.f32.xlu0 %v307_v10 }
 0x17d   : > { %v309_v14 = vpop.xlane.xlu0 %308 }
 0x17e   : > { %v1508_v15 = vmax.f32 %v1505_v13, %v309_v14 }
 0x180   : > { %v311_v16 = vsub.f32 %v1505_v13, %v1508_v15  ;;  %418 = vst.msk [vmem:[#allocation2] sm:$0xff] %vm328_vm5, %v1508_v15  ;;  %316 = vperm.xlu0 %1323, %v1508_v15  }
 0x184   : > { %1334 = vset.pattern.permute.xlu0 %v1420_v35 }
 0x187   : > { %v1533_v37 = vld [vmem:[#allocation2] sm:$0xff] }
 0x1ff   : > { %v317_v21 = vpop.permute.xlu0 %316 }
 0x200   : > { %v319_v22 = vsub.f32 %v301_v8, %v317_v21 }
 0x202   : > { %v320_v23 = vmul.f32 1.442695, %v319_v22 }
 0x204   : > { %1371 = vpow2.f32 %v320_v23 }
 0x20e   : > { %v1516_v28 = vpop.eup %1371 }
 0x20f   : > { %1209 = vmatmul.mubr.msk.f32.vlgmr.msra.gmra.mrb[0].mxu1 %vm306_vm4, %v1516_v28  ;;  %v324_v4 = vsel %vm306_vm4, %v1516_v28, 0.0  ;;  %v312_v28 = vmul.f32 1.442695, %v311_v16 }
 0x210   : > { %1263 = vmatpush3.bf16.xpose.msk.msra.mxu1 %vm1478_vm2, %v1261_v27  ;;  %1215 = vmatprep.mubr.msk.f32.mxu1 %vm1414_vm0, %v1415_v1 }
 0x211   : > { %1271 = vmatprep.subr.bf16.mxu1 %v1413_v0 }
 0x217   : > { %1216 = vmatmul.mubr.msk.f32.vlgmr.msra.gmra.mrb[2].mxu1 %vm225_vm1, %v420_v29 }
 0x218   : > { %1236 = vmatprep.mubr.msk.f32.mxu1 %vm1414_vm0, %v1415_v1 }
 0x2e2   : > { %v1528_v30 = vpop.f32.mrb[0].mxu1 }
 0x2e3   : > { %v1210_v31 = vpop.f32.mrb[1].mxu1 }
 0x2ea   : > { %v497_v32 = vpop.f32.mrb[2].mxu1 }
 0x2eb   : > { %v1217_v33 = vpop.f32.mrb[3].mxu1  ;;  %v502_v34 = vsel %vm306_vm4, %v497_v32, -inf }
 0x2ec   : > { %503 = vmax.xlane.f32.xlu1 %v502_v34 }
 0x2fd   : > { %1336 = vrot.lane.b32.xlu1 %v1500_v12, %s1421_s23 }
 0x379   : > { %v504_v36 = vpop.xlane.xlu1 %503 }
 0x37a   : > { %v1536_v38 = vmax.f32 %v1533_v37, %v504_v36 }
 0x37c   : > { %v506_v39 = vsub.f32 %v1533_v37, %v1536_v38  ;;  %618 = vst.msk [vmem:[#allocation2] sm:$0xff] %vm523_vm6, %v1536_v38  ;;  %511 = vperm.xlu0 %1334, %v1536_v38  }
 0x37d   : > { %v1337_v40 = vpop.permute.xlu1 %1336 }
 0x37e   : > { %v1339_v41 = vunpack.i.h.bf16 %v1337_v40  ;;  %v1338_v42 = vunpack.i.l.bf16 %v1337_v40 }
 0x380   : > { %1341 = vrot.lane.b32.xlu0 %v1500_v12, %s1422_s24  ;;  %v1265_v43 = vpack.c.bf16 %v1339_v41, %v1338_v42  ;;  %v322_v41 = vld [vmem:[#allocation3] sm:$0xff] }
 0x381   : > { %1356 = vset.pattern.permute.xlu0 %v1426_v24 }
 0x382   : > { %1266 = vmatpush3.bf16.msra.mxu0 %v1265_v43 }
 0x383   : > { %1267 = vmatprep.subr.bf16.mxu0 %v1413_v0  ;;  %v1562_v59 = vld [vmem:[#allocation2] sm:$0xff] }
 0x384   : > { %619 = vrot.lane.b32.xlu0 %v1491_v6, %s1422_s24 }
 0x3fb   : > { %v512_v44 = vpop.permute.xlu0 %511 }
 0x3fc   : > { %v514_v45 = vsub.f32 %v497_v32, %v512_v44 }
 0x3fe   : > { %v515_v46 = vmul.f32 1.442695, %v514_v45 }
 0x3ff   : > { %v1342_v47 = vpop.permute.xlu0 %1341 }
 0x400   : > { %1373 = vpow2.f32 %v515_v46  ;;  %v1344_v48 = vunpack.i.h.bf16 %v1342_v47  ;;  %v1343_v49 = vunpack.i.l.bf16 %v1342_v47 }
 0x402   : > { %v1268_v50 = vpack.c.bf16 %v1344_v48, %v1343_v49 }
 0x403   : > { %v620_v52 = vpop.permute.xlu0 %619 }
 0x40a   : > { %v1546_v51 = vpop.eup %1373 }
 0x40b   : > { %1223 = vmatmul.mubr.msk.f32.vlgmr.msra.gmra.mrb[2].mxu0 %vm306_vm4, %v1546_v51 }
 0x40c   : > { %1270 = vmatpush3.bf16.xpose.msk.msra.mxu0 %vm1478_vm2, %v1268_v50  ;;  %1229 = vmatprep.mubr.msk.f32.mxu0 %vm1414_vm0, %v1415_v1 }
 0x40d   : > { %1278 = vmatprep.subr.bf16.mxu0 %v1413_v0 }
 0x413   : > { %1230 = vmatmul.mubr.msk.f32.vlgmr.msra.gmra.mrb[4].mxu0 %vm225_vm1, %v620_v52 }
 0x414   : > { %1250 = vmatprep.mubr.msk.f32.mxu0 %vm1414_vm0, %v1415_v1 }
 0x4de   : > { %v1558_v53 = vpop.f32.mrb[2].mxu0 }
 0x4df   : > { %v1224_v54 = vpop.f32.mrb[3].mxu0 }
 0x4e6   : > { %v697_v55 = vpop.f32.mrb[4].mxu0 }
 0x4e7   : > { %v1231_v56 = vpop.f32.mrb[5].mxu0  ;;  %v702_v57 = vsel %vm306_vm4, %v697_v55, -inf }
 0x4e8   : > { %703 = vmax.xlane.f32.xlu0 %v702_v57 }
 0x575   : > { %v704_v60 = vpop.xlane.xlu0 %703 }
 0x576   : > { %v1565_v61 = vmax.f32 %v1562_v59, %v704_v60 }
 0x578   : > { %v706_v62 = vsub.f32 %v1562_v59, %v1565_v61  ;;  %818 = vst.msk [vmem:[#allocation2] sm:$0xff] %vm723_vm7, %v1565_v61  ;;  %711 = vperm.xlu1 %1345, %v1565_v61  }
 0x57a   : > { %v707_v47 = vmul.f32 1.442695, %v706_v62 }
 0x57c   : > { %1347 = vrot.lane.b32.xlu1 %v1500_v12, %s1424_s25 }
 0x57d   : > { %1363 = vset.pattern.permute.xlu1 %v1420_v35 }
 0x57f   : > { %v901_v26 = vld [vmem:[#allocation2] sm:$0xff] }
 0x580   : > { %1352 = vrot.lane.b32.xlu1 %v1500_v12, %s1425_s26 }
 0x584   : > { %819 = vrot.lane.b32.xlu1 %v1491_v6, %s1425_s26 }
 0x5f7   : > { %v712_v63 = vpop.permute.xlu1 %711 }
 0x5f8   : > { %v714_v2 = vsub.f32 %v697_v55, %v712_v63  ;;  %v330_v55 = vld [vmem:[#allocation4] sm:$0xff] }
 0x5fa   : > { %v715_v3 = vmul.f32 1.442695, %v714_v2 }
 0x5fb   : > { %v1348_v5 = vpop.permute.xlu1 %1347 }
 0x5fc   : > { %1375 = vpow2.f32 %v715_v3  ;;  %v1350_v7 = vunpack.i.h.bf16 %v1348_v5  ;;  %v1349_v8 = vunpack.i.l.bf16 %v1348_v5 }
 0x5fd   : > { %1377 = vpow2.f32 %v312_v28 }
 0x5fe   : > { %v1272_v9 = vpack.c.bf16 %v1350_v7, %v1349_v8 }
 0x5ff   : > { %v1353_v10 = vpop.permute.xlu1 %1352 }
 0x600   : > { %1273 = vmatpush3.bf16.msra.mxu1 %v1272_v9  ;;  %v1355_v14 = vunpack.i.h.bf16 %v1353_v10  ;;  %v1354_v17 = vunpack.i.l.bf16 %v1353_v10 }
 0x601   : > { %1274 = vmatprep.subr.bf16.mxu1 %v1413_v0 }
 0x602   : > { %v1275_v18 = vpack.c.bf16 %v1355_v14, %v1354_v17 }
 0x603   : > { %v820_v6 = vpop.permute.xlu1 %819 }
 0x606   : > { %v1376_v19 = vpop.eup %1375 }
 0x607   : > { %1237 = vmatmul.mubr.msk.f32.vlgmr.msra.gmra.mrb[4].mxu1 %vm306_vm4, %v1376_v19  ;;  %v719_v36 = vsel %vm306_vm4, %v1376_v19, 0.0  ;;  %v1378_v40 = vpop.eup %1377 }
 0x608   : > { %1243 = vmatprep.mubr.msk.f32.mxu1 %vm1414_vm0, %v1415_v1  ;;  %v323_v42 = vmul.f32 %v1378_v40, %v322_v41  ;;  %v507_v1 = vmul.f32 1.442695, %v506_v39 }
 0x609   : > { %1277 = vmatpush3.bf16.xpose.msk.msra.mxu1 %vm1478_vm2, %v1275_v18 }
 0x610   : > { %1244 = vmatmul.mubr.msk.f32.vlgmr.msra.gmra.mrb[6].mxu1 %vm225_vm1, %v820_v6 }
 0x6da   : > { %v1583_v20 = vpop.f32.mrb[4].mxu1 }
 0x6db   : > { %v1238_v21 = vpop.f32.mrb[5].mxu1 }
 0x6e3   : > { %v897_v22 = vpop.f32.mrb[6].mxu1 }
 0x6e4   : > { %v1245_v23 = vpop.f32.mrb[7].mxu1  ;;  %v902_v0 = vsel %vm306_vm4, %v897_v22, -inf }
 0x6e5   : > { %903 = vmax.xlane.f32.xlu1 %v902_v0 }
 0x6f6   : > { %1358 = vrot.lane.b32.xlu1 %v1500_v12, %s1427_s27  ;;  %v519_v12 = vsel %vm306_vm4, %v1546_v51, 0.0 }
 0x71a   : > { %325 = vadd.xlane.f32.xlu1 %v324_v4 }
 0x772   : > { %v904_v25 = vpop.xlane.xlu1 %903 }
 0x773   : > { %v905_v27 = vmax.f32 %v901_v26, %v904_v25 }
 0x775   : > { %v906_v29 = vsub.f32 %v901_v26, %v905_v27  ;;  %1018 = vst.msk [vmem:[#allocation2] sm:$0xff] %vm923_vm8, %v905_v27  ;;  %911 = vperm.xlu0 %1356, %v905_v27  }
 0x776   : > { %v1359_v31 = vpop.permute.xlu1 %1358 }
 0x777   : > { %v1361_v32 = vunpack.i.h.bf16 %v1359_v31  ;;  %v1360_v33 = vunpack.i.l.bf16 %v1359_v31  ;;  %v907_v49 = vmul.f32 1.442695, %v906_v29 }
 0x779   : > { %v1279_v34 = vpack.c.bf16 %v1361_v32, %v1360_v33  ;;  %1362 = vset.pattern.permute.xlu0 %v1417_v11 }
 0x77b   : > { %1280 = vmatpush3.bf16.msra.mxu0 %v1279_v34 }
 0x794   : > { %520 = vadd.xlane.f32.xlu0 %v519_v12 }
 0x798   : > { %720 = vadd.xlane.f32.xlu0 %v719_v36 }
 0x7a7   : > { %v326_v43 = vpop.xlane.xlu1 %325 }
 0x7a8   : > { %v327_v44 = vadd.f32 %v326_v43, %v323_v42 }
 0x7aa   : > { %329 = vst.msk [vmem:[#allocation3] sm:$0xff] %vm328_vm5, %v327_v44 }
 0x7ae   : > { %333 = vperm.xlu0 %1362, %v1378_v40  }
 0x7b1   : > { %v517_v51 = vld [vmem:[#allocation3] sm:$0xff] }
 0x7b2   : > { %1368 = vset.pattern.permute.xlu0 %v1423_v58 }
 0x7f4   : > { %v912_v45 = vpop.permute.xlu0 %911 }
 0x7f5   : > { %v914_v13 = vsub.f32 %v897_v22, %v912_v45 }
 0x7f7   : > { %v915_v15 = vmul.f32 1.442695, %v914_v13 }
 0x7f9   : > { %1379 = vpow2.f32 %v915_v15 }
 0x7fa   : > { %1381 = vpow2.f32 %v507_v1 }
 0x7fb   : > { %1383 = vpow2.f32 %v707_v47 }
 0x7fc   : > { %1385 = vpow2.f32 %v907_v49 }
 0x803   : > { %v1380_v16 = vpop.eup %1379 }
 0x804   : > { %1251 = vmatmul.mubr.msk.f32.vlgmr.msra.gmra.mrb[6].mxu0 %vm306_vm4, %v1380_v16  ;;  %v919_v46 = vsel %vm306_vm4, %v1380_v16, 0.0  ;;  %v1382_v48 = vpop.eup %1381 }
 0x805   : > { %920 = vadd.xlane.f32.xlu1 %v919_v46  ;;  %v1384_v50 = vpop.eup %1383  ;;  %v518_v37 = vmul.f32 %v1382_v48, %v517_v51 }
 0x806   : > { %v1386_v52 = vpop.eup %1385 }
 0x816   : > { %528 = vperm.xlu1 %1363, %v1382_v48  }
 0x81a   : > { %612 = vrot.lane.b32.xlu1 %v1558_v53, %s1428_s28 }
 0x81b   : > { %1364 = vset.pattern.permute.xlu1 %v1423_v58 }
 0x81e   : > { %728 = vperm.xlu1 %1364, %v1384_v50  }
 0x821   : > { %v521_v38 = vpop.xlane.xlu0 %520 }
 0x822   : > { %v522_v39 = vadd.f32 %v521_v38, %v518_v37  ;;  %812 = vrot.lane.b32.xlu1 %v1583_v20, %s1429_s29 }
 0x823   : > { %1365 = vset.pattern.permute.xlu1 %v1426_v24 }
 0x824   : > { %524 = vst.msk [vmem:[#allocation3] sm:$0xff] %vm523_vm6, %v522_v39 }
 0x825   : > { %v721_v54 = vpop.xlane.xlu0 %720 }
 0x826   : > { %928 = vperm.xlu1 %1365, %v1386_v52  }
 0x82a   : > { %1366 = vset.pattern.permute.xlu1 %v1417_v11 }
 0x82b   : > { %v717_v53 = vld [vmem:[#allocation3] sm:$0xff] }
 0x82c   : > { %v718_v56 = vmul.f32 %v1384_v50, %v717_v53 }
 0x82d   : > { %v334_v57 = vpop.permute.xlu0 %333 }
 0x82e   : > { %v722_v58 = vadd.f32 %v721_v54, %v718_v56  ;;  %v336_v59 = vmul.f32 %v334_v57, %v330_v55 }
 0x830   : > { %724 = vst.msk [vmem:[#allocation3] sm:$0xff] %vm723_vm7, %v722_v58  ;;  %v416_v60 = vadd.f32 %v1528_v30, %v336_v59 }
 0x832   : > { %417 = vst.msk [vmem:[#allocation4] sm:$0xff] %vm225_vm1, %v416_v60 }
 0x837   : > { %v917_v61 = vld [vmem:[#allocation3] sm:$0xff] }
 0x838   : > { %v918_v62 = vmul.f32 %v1386_v52, %v917_v61 }
 0x839   : > { %v525_v11 = vld [vmem:[#allocation4] sm:$0xff] }
 0x892   : > { %v921_v63 = vpop.xlane.xlu1 %920 }
 0x893   : > { %v922_v2 = vadd.f32 %v921_v63, %v918_v62 }
 0x895   : > { %924 = vst.msk [vmem:[#allocation3] sm:$0xff] %vm923_vm8, %v922_v2 }
 0x896   : > { %v529_v3 = vpop.permute.xlu1 %528 }
 0x897   : > { %v531_v5 = vmul.f32 %v529_v3, %v525_v11 }
 0x89a   : > { %v613_v7 = vpop.permute.xlu1 %612 }
 0x89b   : > { %v615_v8 = vadd.f32 %v613_v7, %v531_v5 }
 0x89c   : > { %v1022_v9 = vld [vmem:[#allocation3] sm:$0xff] }
 0x89d   : > { %1387 = vrcp.f32 %v1022_v9  ;;  %617 = vst.msk [vmem:[#allocation4] sm:$0xff] %vm616_vm10, %v615_v8 }
 0x89e   : > { %v729_v10 = vpop.permute.xlu1 %728 }
 0x8a2   : > { %v813_v17 = vpop.permute.xlu1 %812 }
 0x8a4   : > { %v725_v30 = vld [vmem:[#allocation4] sm:$0xff] }
 0x8a5   : > { %v731_v14 = vmul.f32 %v729_v10, %v725_v30 }
 0x8a6   : > { %v929_v21 = vpop.permute.xlu1 %928 }
 0x8a7   : > { %v1388_v18 = vpop.eup %1387  ;;  %v815_v19 = vadd.f32 %v813_v17, %v731_v14 }
 0x8a8   : > { %1039 = vperm.xlu0 %1368, %v1388_v18   ;;  %1027 = vperm.xlu1 %1366, %v1388_v18  }
 0x8a9   : > { %817 = vst.msk [vmem:[#allocation4] sm:$0xff] %vm816_vm11, %v815_v19 }
 0x8ac   : > { %1367 = vset.pattern.permute.xlu1 %v1420_v35  ;;  %1370 = vset.pattern.permute.xlu0 %v1426_v24 }
 0x8b0   : > { %v925_v22 = vld [vmem:[#allocation4] sm:$0xff] }
 0x8b1   : > { %v931_v0 = vmul.f32 %v929_v21, %v925_v22 }
 0x8d7   : > { %v1007_v6 = vpop.f32.mrb[6].mxu0 }
 0x8d8   : > { %1012 = vrot.lane.b32.xlu1 %v1007_v6, %s1430_s30  ;;  %v1252_v20 = vpop.f32.mrb[7].mxu0 }
 0x8dc   : > { %1033 = vperm.xlu1 %1367, %v1388_v18  }
 0x8e0   : > { %1369 = vset.pattern.permute.xlu1 %v1426_v24 }
 0x8e1   : > { %1045 = vperm.xlu1 %1369, %v1388_v18  }
 0x927   : > { %v1028_v23 = vpop.permute.xlu1 %1027  ;;  %v1040_v27 = vpop.permute.xlu0 %1039 }
 0x94a   : > { %v1013_v4 = vpop.permute.xlu1 %1012 }
 0x94b   : > { %v1015_v25 = vadd.f32 %v1013_v4, %v931_v0 }
 0x94d   : > { %1017 = vst.msk [vmem:[#allocation4] sm:$0xff] %vm1016_vm12, %v1015_v25 }
 0x954   : > { %v1024_v35 = vld [vmem:[#allocation4] sm:$0xff] }
 0x955   : > { %v1030_v26 = vmul.f32 %v1028_v23, %v1024_v35  ;;  %v1042_v31 = vmul.f32 %v1040_v27, %v1024_v35 }
 0x957   : > { %1031 = vst.msk [vmem:[%s212_s5] sm:$0xff] %vm225_vm1, %v1030_v26 }
 0x95b   : > { %v1034_v24 = vpop.permute.xlu1 %1033 }
 0x95c   : > { %v1036_v29 = vmul.f32 %v1034_v24, %v1024_v35 }
 0x95e   : > { %1037 = vst.msk [vmem:[%s212_s5] sm:$0xff] %vm616_vm10, %v1036_v29 }
 0x95f   : > { %1043 = vst.msk [vmem:[%s212_s5] sm:$0xff] %vm816_vm11, %v1042_v31 }
 0x960   : > { %v1046_v32 = vpop.permute.xlu1 %1045 }
 0x961   : > { %v1048_v33 = vmul.f32 %v1046_v32, %v1024_v35 }
 0x963   : > { %1049 = vst.msk [vmem:[%s212_s5] sm:$0xff] %vm1016_vm12, %v1048_v33 }
 0x964 PF: > { %s12_s11 = sadd.s32 1, %s1411_s11   ;;  %s1648_s9 = smov %s1407_s10 }
 0x965   : > { %p9_p5 = scmp.ge.s32.totalorder %s12_s11, 4   ;;  %s1649_s10 = smov %s1651_s12 }
 0x967   :  { %11 = sbr.rel (!%p9_p5) target bundleno = 2 (0x2), region = 69 }

// kernel: transformer_decoder_layer.9
= control target key start
LH: loop header
LB: loop body
LE: loop exit
PB: predicated region body
PF: predicated region fallthrough
CT: control target
= control target key end

     0   :  { %vm36_vm0 = vcmask 261120   ;;  %v388_v22 = vmov 0.0   ;;  %vm150_vm1 = vcmask 523264   ;;  %s513_s1 = inlined_call_operand.vmem [shape: f32[32,64], index: 1, kind: input, shape index: {}]   ;;  %s514_s5 = inlined_call_operand.vmem [shape: f32[1,32], index: 5, kind: input, shape index: {}, may-alias: {5,7}]   ;;  %s515_s6 = inlined_call_operand.vmem [shape: f32[1,32], index: 6, kind: input, shape index: {}, may-alias: {6,8}]   ;;  %s516_s0 = inlined_call_operand.vmem [shape: f32[16,32], index: 0, kind: input, shape index: {}]   ;;  %s517_s3 = inlined_call_operand.vmem [shape: f32[64,32], index: 3, kind: input, shape index: {}]   ;;  %s518_s2 = inlined_call_operand.vmem [shape: f32[1,64], index: 2, kind: input, shape index: {}]   ;;  %s519_s4 = inlined_call_operand.vmem [shape: f32[1,32], index: 4, kind: input, shape index: {}]   ;;  %s520_s7 = inlined_call_operand.vmem [shape: f32[1,32], index: 7, kind: input, shape index: {}, may-alias: {5,7}]   ;;  %s521_s8 = inlined_call_operand.vmem [shape: f32[1,32], index: 8, kind: input, shape index: {}, may-alias: {6,8}]   ;;  %s522_s9 = inlined_call_operand.vmem [shape: f32[16,32], index: 9, kind: output, shape index: {}]  }
   0x1   :  { %v45_v0 = vld [vmem:[%s513_s1] sm:$0xff]  ;;  %v46_v1 = vld [vmem:[%s513_s1 + $0x8] sm:$0xff]  ;;  %v47_v2 = vld [vmem:[%s513_s1 + $0x10] sm:$0xff]  ;;  %38 = vst.msk [vmem:[#allocation3 + $0x8] sm:$0xff] %vm36_vm0, %v388_v22 }
   0x2   :  { %v359_v3 = vpack.c.bf16 %v46_v1, %v45_v0  ;;  %v48_v4 = vld [vmem:[%s513_s1 + $0x18] sm:$0xff]  ;;  %v39_v5 = vld [vmem:[%s516_s0] sm:$0xff]  ;;  %v40_v6 = vld [vmem:[%s516_s0 + $0x8] sm:$0xff]  ;;  %37 = vst.msk [vmem:[#allocation3] sm:$0xff] %vm36_vm0, %v388_v22 }
   0x3   :  { %v363_v7 = vpack.c.bf16 %v48_v4, %v47_v2  ;;  %41 = vst.msk [vmem:[#allocation2] sm:$0xff] %vm36_vm0, %v39_v5  ;;  %42 = vst.msk [vmem:[#allocation2 + $0x8] sm:$0xff] %vm36_vm0, %v40_v6  ;;  %v142_v8 = vld [vmem:[%s517_s3] sm:$0xff]  ;;  %v143_v9 = vld [vmem:[%s517_s3 + $0x8] sm:$0xff] }
   0x4   :  { %v144_v10 = vld [vmem:[%s517_s3 + $0x10] sm:$0xff]  ;;  %360 = vmatprep.subr.bf16.mxu0 %v359_v3  ;;  %v367_v11 = vpack.c.bf16 %v143_v9, %v142_v8  ;;  %v145_v12 = vld [vmem:[%s517_s3 + $0x18] sm:$0xff]  ;;  %v146_v14 = vld [vmem:[%s517_s3 + $0x20] sm:$0xff] }
   0x5   :  { %362 = vmatpush3.bf16.msra.mxu0 %v359_v3  ;;  %v371_v13 = vpack.c.bf16 %v145_v12, %v144_v10  ;;  %v147_v15 = vld [vmem:[%s517_s3 + $0x28] sm:$0xff]  ;;  %v148_v19 = vld [vmem:[%s517_s3 + $0x30] sm:$0xff]  ;;  %v149_v20 = vld [vmem:[%s517_s3 + $0x38] sm:$0xff] }
   0x6   :  { %364 = vmatprep.subr.bf16.mxu0 %v363_v7  ;;  %368 = vmatprep.subr.bf16.mxu1 %v367_v11  ;;  %v375_v16 = vpack.c.bf16 %v147_v15, %v146_v14  ;;  %v379_v21 = vpack.c.bf16 %v149_v20, %v148_v19  ;;  %v305_v23 = vld [vmem:[%s518_s2] ss:$0 sm:$0xff] }
   0x7   :  { %370 = vmatpush3.bf16.msra.mxu1 %v367_v11  ;;  %v310_v36 = vld [vmem:[%s519_s4] ss:$0 sm:$0xff] }
   0x8   :  { %372 = vmatprep.subr.bf16.mxu1 %v371_v13  ;;  %v141_v30 = vld [vmem:[#allocation3 + $0x8] sm:$0xff]  ;;  %v311_v62 = vld [vmem:[%s520_s7] ss:$0 sm:$0xff] }
   0x9   :  { %366 = vmatpush3.bf16.msra.mxu0 %v363_v7  ;;  %v140_v31 = vld [vmem:[#allocation3] sm:$0xff]  ;;  %v312_v0 = vld [vmem:[%s521_s8] ss:$0 sm:$0xff] }
   0xa   :  { %v43_v17 = vld [vmem:[#allocation2] sm:$0xff]  ;;  %v44_v18 = vld [vmem:[#allocation2 + $0x8] sm:$0xff] }
   0xb   :  { %337 = vmatprep.mubr.msk.f32.mxu0 %vm36_vm0, %v43_v17  ;;  %374 = vmatpush3.bf16.msra.mxu1 %v371_v13 }
   0xc   :  { %338 = vmatmul.mubr.msk.f32.vlgmr.msra.gmra.mrb[0].mxu0 %vm36_vm0, %v44_v18  ;;  %376 = vmatprep.subr.bf16.mxu1 %v375_v16 }
   0xf   :  { %378 = vmatpush3.bf16.msra.mxu1 %v375_v16 }
  0x10   :  { %380 = vmatprep.subr.bf16.mxu1 %v379_v21 }
  0x13   :  { %382 = vmatpush3.bf16.msra.mxu1 %v379_v21 }
  0xdf   :  { %v339_v24 = vpop.f32.mrb[0].mxu0 }
  0xe0   :  { %v135_v25 = vadd.f32 %v339_v24, %v305_v23  ;;  %v129_v26 = vpop.f32.mrb[1].mxu0 }
  0xe1   :  { %v130_v27 = vadd.f32 %v305_v23, %v129_v26 }
  0xe2   :  { %v139_v29 = vmax.f32 %v135_v25, 0.0 }
  0xe3   :  { %v138_v28 = vmax.f32 %v130_v27, 0.0 }
  0xe5   :  { %356 = vmatprep.mubr.msk.f32.mxu1 %vm150_vm1, %v138_v28 }
  0xe6   :  { %357 = vmatmul.mubr.msk.f32.vlgmr.msra.gmra.mrb[0].mxu1 %vm150_vm1, %v139_v29 }
 0x1b9   :  { %v358_v32 = vpop.f32.mrb[0].mxu1 }
 0x1ba   :  { %v233_v33 = vadd.f32 %v358_v32, %v141_v30  ;;  %v223_v34 = vpop.f32.mrb[1].mxu1 }
 0x1bb   :  { %v232_v35 = vadd.f32 %v223_v34, %v140_v31 }
 0x1bc   :  { %235 = vst.msk [vmem:[#allocation3 + $0x8] sm:$0xff] %vm36_vm0, %v233_v33 }
 0x1bd   :  { %234 = vst.msk [vmem:[#allocation3] sm:$0xff] %vm36_vm0, %v232_v35 }
 0x1c3   :  { %v240_v37 = vld [vmem:[#allocation3 + $0x8] sm:$0xff] }
 0x1c4   :  { %v239_v38 = vld [vmem:[#allocation3] sm:$0xff]  ;;  %v249_v40 = vadd.f32 %v310_v36, %v240_v37 }
 0x1c5   :  { %v248_v39 = vadd.f32 %v310_v36, %v239_v38 }
 0x1c6   :  { %v253_v43 = vadd.f32 %v249_v40, %v40_v6 }
 0x1c7   :  { %v252_v41 = vadd.f32 %v248_v39, %v39_v5 }
 0x1c8   :  { %v257_v44 = vsel %vm36_vm0, %v253_v43, 0.0 }
 0x1c9   :  { %v254_v42 = vsel %vm36_vm0, %v252_v41, 0.0 }
 0x1ca   :  { %255 = vadd.xlane.f32.xlu0 %v254_v42 }
 0x1ce   :  { %258 = vadd.xlane.f32.xlu0 %v257_v44 }
 0x257   :  { %v256_v45 = vpop.xlane.xlu0 %255 }
 0x258   :  { %v261_v46 = vmul.f32 0.03125, %v256_v45 }
 0x25a   :  { %v263_v47 = vsub.f32 %v252_v41, %v261_v46 }
 0x25b   :  { %v259_v48 = vpop.xlane.xlu0 %258 }
 0x25c   :  { %v262_v49 = vmul.f32 0.03125, %v259_v48  ;;  %v265_v50 = vmul.f32 %v263_v47, %v263_v47 }
 0x25e   :  { %v264_v51 = vsub.f32 %v253_v43, %v262_v49  ;;  %v267_v52 = vsel %vm36_vm0, %v265_v50, 0.0 }
 0x25f   :  { %268 = vadd.xlane.f32.xlu1 %v267_v52 }
 0x260   :  { %v266_v53 = vmul.f32 %v264_v51, %v264_v51 }
 0x262   :  { %v270_v54 = vsel %vm36_vm0, %v266_v53, 0.0 }
 0x263   :  { %271 = vadd.xlane.f32.xlu1 %v270_v54 }
 0x2ec   :  { %v269_v55 = vpop.xlane.xlu1 %268 }
 0x2ed   :  { %v273_v56 = vmul.f32 0.03125, %v269_v55 }
 0x2ef   :  { %v275_v57 = vadd.f32 1e-05, %v273_v56 }
 0x2f0   :  { %v272_v58 = vpop.xlane.xlu1 %271 }
 0x2f1   :  { %384 = vrsqrt.f32 %v275_v57  ;;  %v274_v59 = vmul.f32 0.03125, %v272_v58 }
 0x2f3   :  { %v276_v60 = vadd.f32 1e-05, %v274_v59 }
 0x2f5   :  { %386 = vrsqrt.f32 %v276_v60 }
 0x2fb   :  { %v385_v61 = vpop.eup %384 }
 0x2fc   :  { %v279_v63 = vmul.f32 %v385_v61, %v263_v47 }
 0x2fe   :  { %v288_v1 = vmul.f32 %v311_v62, %v279_v63 }
 0x2ff   :  { %v387_v2 = vpop.eup %386 }
 0x300   :  { %v297_v3 = vadd.f32 %v312_v0, %v288_v1  ;;  %v280_v4 = vmul.f32 %v387_v2, %v264_v51 }
 0x302   :  { %299 = vst.msk [vmem:[%s522_s9] sm:$0xff] %vm36_vm0, %v297_v3  ;;  %v289_v5 = vmul.f32 %v311_v62, %v280_v4 }
 0x304   :  { %v298_v6 = vadd.f32 %v312_v0, %v289_v5 }
 0x306   :  { %300 = vst.msk [vmem:[%s522_s9 + $0x8] sm:$0xff] %vm36_vm0, %v298_v6 }

</bundles_post_ra>
